<compile_context>
chip_gen: v6e
topology: v6e:2x2x1
jax: 0.10.0
libtpu: 0.0.40
codegen_flags: <defaults>
</compile_context>

<pallas_src>
import math

import jax
import jax.numpy as jnp
from jax.experimental import pallas as pl
from jax.experimental.pallas import tpu as pltpu


def dcgru_kernel(adj_ref, x_ref, h_ref,
                 wxru_ref, whru_ref, wxc_ref, whc_ref,
                 bru_ref, bc_ref, out_ref):
    f32, bf16 = jnp.float32, jnp.bfloat16

    adj = adj_ref[...]                       # (N, N)       bf16, transposed random-walk matrix
    x3 = x_ref[...]                          # (Bt, N, Din) bf16, batch-major input tile
    h3 = h_ref[...]                          # (Bt, N, U)   f32,  batch-major state tile

    Bt, N, Din = x3.shape
    U = h3.shape[2]
    M = wxru_ref.shape[0]                    # = max_diffusion_step + 1

    # Per-order weight slices / biases (small, loaded once per grid step).
    wxru = wxru_ref[...]                     # (M, Din, 2U) bf16
    whru = whru_ref[...]                     # (M, U,   2U) bf16
    wxc = wxc_ref[...]                       # (M, Din, U)  bf16
    whc = whc_ref[...]                       # (M, U,   U)  bf16
    b_ru = bru_ref[...]                      # (1, 2U) f32
    b_c = bc_ref[...]                        # (1, U)  f32

    # -------- layout helpers (leading-dim indexing / static slices + one concat) ----
    def to_wide(z3):
        # batch-major (Bt, N, C) -> node-major (N, Bt*C), lane order (b, c)
        return jnp.concatenate([z3[b] for b in range(Bt)], axis=1)

    def to_rows(z_wide, c):
        # node-major (N, Bt*C) -> batch-major rows (Bt*N, C), row order (b, n)
        return jnp.concatenate([z_wide[:, b * c:(b + 1) * c] for b in range(Bt)],
                               axis=0)

    def cheb_next(z_prev, z_cur, first):
        # Chebyshev recurrence in node-major layout: bf16 MXU operands, f32 values.
        az = jnp.dot(adj, z_cur.astype(bf16), preferred_element_type=f32)
        return az if first else 2.0 * az - z_prev

    h_rows = h3.reshape(Bt * N, U)           # free leading-dim merge, f32

    # ---------------- phase 1: fused r|u gate + x-contribution to c -----------------
    acc_ru = jnp.zeros((Bt * N, 2 * U), f32) + b_ru
    acc_c = jnp.zeros((Bt * N, U), f32) + b_c

    # order m = 0: terms are the (already batch-major) inputs -> no relayout needed
    x_rows = x3.reshape(Bt * N, Din)                                    # bf16
    h_rows_b = h_rows.astype(bf16)
    acc_ru += jnp.dot(x_rows, wxru[0], preferred_element_type=f32)
    acc_ru += jnp.dot(h_rows_b, whru[0], preferred_element_type=f32)
    acc_c += jnp.dot(x_rows, wxc[0], preferred_element_type=f32)

    if M > 1:
        zx_prev, zx_cur = None, to_wide(x3).astype(f32)                 # (N, Bt*Din)
        zh_prev, zh_cur = None, to_wide(h3)                             # (N, Bt*U)
        for m in range(1, M):
            zx_new = cheb_next(zx_prev, zx_cur, m == 1)
            zh_new = cheb_next(zh_prev, zh_cur, m == 1)
            xm = to_rows(zx_new.astype(bf16), Din)                      # (Bt*N, Din)
            hm = to_rows(zh_new.astype(bf16), U)                        # (Bt*N, U)
            acc_ru += jnp.dot(xm, wxru[m], preferred_element_type=f32)
            acc_ru += jnp.dot(hm, whru[m], preferred_element_type=f32)
            acc_c += jnp.dot(xm, wxc[m], preferred_element_type=f32)
            zx_prev, zx_cur = zx_cur, zx_new
            zh_prev, zh_cur = zh_cur, zh_new

    ru = jax.nn.sigmoid(acc_ru)                                         # (Bt*N, 2U) f32
    r, u = ru[:, :U], ru[:, U:]                                         # static lane split

    # ---------------- phase 2: candidate state from the r*h diffusion ---------------
    rh_rows = r * h_rows                                                # f32 elementwise
    acc_c += jnp.dot(rh_rows.astype(bf16), whc[0], preferred_element_type=f32)

    if M > 1:
        zr_prev, zr_cur = None, to_wide(rh_rows.reshape(Bt, N, U))      # (N, Bt*U)
        for m in range(1, M):
            zr_new = cheb_next(zr_prev, zr_cur, m == 1)
            rm = to_rows(zr_new.astype(bf16), U)
            acc_c += jnp.dot(rm, whc[m], preferred_element_type=f32)
            zr_prev, zr_cur = zr_cur, zr_new

    c = jnp.tanh(acc_c)                                                 # (Bt*N, U) f32
    new_h = u * h_rows + (1.0 - u) * c                                  # (Bt*N, U) f32

    # Lane-dense node-major store (N, Bt*U); wrapper un-permutes to (B, N*U).
    out_ref[...] = to_wide(new_h.reshape(Bt, N, U))


def random_walk_t(adj):
    """adj_mx = (D^-1 (A + I)).T  -- matches _calculate_random_walk_matrix().t()."""
    n = adj.shape[0]
    a = adj + jnp.eye(n, dtype=adj.dtype)
    d = jnp.sum(a, axis=1)
    d_inv = 1.0 / d
    d_inv = jnp.where(jnp.isinf(d_inv), jnp.zeros_like(d_inv), d_inv)
    rw = d_inv[:, None] * a
    return rw.T


def dcgru_cell_forward(inputs, hx, adj, params, *, num_nodes, num_units,
                       max_diffusion_step, batch_tile=None):
    B = inputs.shape[0]
    N, U, K = num_nodes, num_units, max_diffusion_step
    M = K + 1
    Din = inputs.shape[1] // N
    F = Din + U

    # Batch tile: pipelined / "parallel" grid axis.  Fall back to a single tile if the
    # tiled output block would not be lane-dense / the batch does not divide.
    if batch_tile is None:
        batch_tile = 8 if B % 8 == 0 else B
    Bt = batch_tile
    if B % Bt != 0 or (Bt != B and (Bt * U) % 128 != 0):
        Bt = B
    grid = (B // Bt,)

    adj_t = random_walk_t(adj).astype(jnp.bfloat16)

    # Batch-major activations (natural layout); x only feeds the MXU -> bf16,
    # h is needed exactly in f32 for the GRU elementwise math -> f32 (single layout).
    x3 = inputs.reshape(B, N, Din).astype(jnp.bfloat16)
    h3 = hx.reshape(B, N, U).astype(jnp.float32)

    # PyTorch gconv weight is (F*M, O) with row index f*M + m.  Re-lay it out as
    # per-order (M, C, O) slices, split into the input-feature part and the state part.
    def split_w(w, out_size):
        w3 = w.reshape(F, M, out_size)
        wx = jnp.transpose(w3[:Din], (1, 0, 2))      # (M, Din, O)
        wh = jnp.transpose(w3[Din:], (1, 0, 2))      # (M, U,   O)
        return wx.astype(jnp.bfloat16), wh.astype(jnp.bfloat16)

    wx_ru, wh_ru = split_w(params['w_ru'], 2 * U)    # r|u kept fused (2U-wide output)
    wx_c, wh_c = split_w(params['w_c'], U)
    b_ru = params['b_ru'].reshape(1, 2 * U).astype(jnp.float32)
    b_c = params['b_c'].reshape(1, U).astype(jnp.float32)

    def full(shape):
        return pl.BlockSpec(shape, lambda i, _s=len(shape): (0,) * _s)

    out = pl.pallas_call(
        dcgru_kernel,
        out_shape=jax.ShapeDtypeStruct((N, B * U), jnp.float32),
        grid=grid,
        in_specs=[
            full((N, N)),                                        # adj (constant block)
            pl.BlockSpec((Bt, N, Din), lambda i: (i, 0, 0)),     # x tile
            pl.BlockSpec((Bt, N, U), lambda i: (i, 0, 0)),       # h tile
            full((M, Din, 2 * U)),                               # Wx_ru
            full((M, U, 2 * U)),                                 # Wh_ru
            full((M, Din, U)),                                   # Wx_c
            full((M, U, U)),                                     # Wh_c
            full((1, 2 * U)),                                    # b_ru
            full((1, U)),                                        # b_c
        ],
        out_specs=pl.BlockSpec((N, Bt * U), lambda i: (0, i)),   # lane-dense node-major
        compiler_params=pltpu.CompilerParams(
            dimension_semantics=("parallel",),
            # Tiny at test shapes; at production shapes size this to
            # weights + adj + 2x double-buffered (x, h, out) batch tiles.
            vmem_limit_bytes=32 * 1024 * 1024,
        ),
    )(adj_t, x3, h3, wx_ru, wh_ru, wx_c, wh_c, b_ru, b_c)

    # node-major (N, B*U) -> (B, N*U); pure layout plumbing, free in XLA.
    return out.reshape(N, B, U).transpose(1, 0, 2).reshape(B, N * U)


# ---------------- pure-JAX reference (direct port of the PyTorch code) ----------------
def _gconv_ref(inputs, adj_mx, state, W, b, num_nodes, K):
    B = inputs.shape[0]
    N = num_nodes
    x_in = inputs.reshape(B, N, -1)
    st = state.reshape(B, N, -1)
    x = jnp.concatenate([x_in, st], axis=2)
    F = x.shape[2]
    x0 = jnp.transpose(x, (1, 2, 0)).reshape(N, F * B)
    xs = [x0]
    if K > 0:
        x1 = adj_mx @ x0
        xs.append(x1)
        xkm2, xkm1 = x0, x1
        for _ in range(2, K + 1):
            x2 = 2.0 * (adj_mx @ xkm1) - xkm2
            xs.append(x2)
            xkm2, xkm1 = xkm1, x2
    M = K + 1
    x = jnp.stack(xs, axis=0).reshape(M, N, F, B)
    x = jnp.transpose(x, (3, 1, 2, 0)).reshape(B * N, F * M)
    O = W.shape[-1]
    x = x @ W + b
    return x.reshape(B, N * O)


def dcgru_ref(inputs, hx, adj, params, *, num_nodes, num_units, max_diffusion_step):
    N, U, K = num_nodes, num_units, max_diffusion_step
    B = inputs.shape[0]
    adj_mx = random_walk_t(adj)
    value = jax.nn.sigmoid(
        _gconv_ref(inputs, adj_mx, hx, params['w_ru'], params['b_ru'], N, K))
    value = value.reshape(B, N, 2 * U)
    r = value[:, :, :U].reshape(B, N * U)
    u = value[:, :, U:].reshape(B, N * U)
    c = jnp.tanh(_gconv_ref(inputs, adj_mx, r * hx, params['w_c'], params['b_c'], N, K))
    return u * hx + (1.0 - u) * c


if __name__ == "__main__":
    # batch, nodes, input_dim, rnn_units, max_diffusion_step
    B, N, Din, U, K = 8, 16, 4, 32, 2
    M = K + 1
    F = Din + U

    key = jax.random.PRNGKey(0)
    k_adj, k_in, k_hx, k_wru, k_wc = jax.random.split(key, 5)

    def xavier_normal(k, shape):
        fan_in, fan_out = shape
        std = math.sqrt(2.0 / (fan_in + fan_out))
        return std * jax.random.normal(k, shape, dtype=jnp.float32)

    params = {
        'w_ru': xavier_normal(k_wru, (F * M, 2 * U)),
        'b_ru': jnp.full((2 * U,), 1.0, dtype=jnp.float32),   # bias_start=1.0 for r/u gate
        'w_c': xavier_normal(k_wc, (F * M, U)),
        'b_c': jnp.zeros((U,), dtype=jnp.float32),            # bias_start=0.0 for candidate
    }

    adj = jax.random.uniform(k_adj, (N, N), dtype=jnp.float32)
    inputs = jax.random.normal(k_in, (B, N * Din), dtype=jnp.float32)
    hx = jax.random.normal(k_hx, (B, N * U), dtype=jnp.float32)

    out = dcgru_cell_forward(inputs, hx, adj, params,
                             num_nodes=N, num_units=U, max_diffusion_step=K,
                             batch_tile=4)          # 2-step "parallel" batch grid
    out = jax.block_until_ready(out)

    ref = jax.block_until_ready(
        dcgru_ref(inputs, hx, adj, params,
                  num_nodes=N, num_units=U, max_diffusion_step=K))

    assert out.shape == (B, N * U)
    assert bool(jnp.all(jnp.isfinite(out)))
    # bf16 MXU operands (f32 accumulation / elementwise) -> tolerance sized for bf16.
    assert bool(jnp.allclose(out, ref, atol=4e-2, rtol=4e-2)), \
        f"max abs diff = {float(jnp.max(jnp.abs(out - ref)))}"
    print("KERNEL_OK")
</pallas_src>

<mosaic_0001>
module attributes {stable_mosaic.version = 11 : i64} {
  func.func @dcgru_kernel(%arg0: i32, %arg1: memref<16x16xbf16, #tpu.memory_space<vmem>>, %arg2: memref<4x16x4xbf16, #tpu.memory_space<vmem>>, %arg3: memref<4x16x32xf32, #tpu.memory_space<vmem>>, %arg4: memref<3x4x64xbf16, #tpu.memory_space<vmem>>, %arg5: memref<3x32x64xbf16, #tpu.memory_space<vmem>>, %arg6: memref<3x4x32xbf16, #tpu.memory_space<vmem>>, %arg7: memref<3x32x32xbf16, #tpu.memory_space<vmem>>, %arg8: memref<1x64xf32, #tpu.memory_space<vmem>>, %arg9: memref<1x32xf32, #tpu.memory_space<vmem>>, %arg10: memref<16x128xf32, #tpu.memory_space<vmem>>) attributes {dimension_semantics = [#tpu.dimension_semantics<parallel>], iteration_bounds = array<i64: 2>, scalar_prefetch = 0 : i64, scratch_operands = 0 : i64, tpu.core_type = #tpu.core_type<tc>, window_params = [{pipeline_mode = #tpu.pipeline_mode<synchronous>, transform_indices = @transform_0, window_bounds = array<i64: 16, 16>}, {transform_indices = @transform_1, window_bounds = array<i64: 4, 16, 4>}, {transform_indices = @transform_2, window_bounds = array<i64: 4, 16, 32>}, {pipeline_mode = #tpu.pipeline_mode<synchronous>, transform_indices = @transform_3, window_bounds = array<i64: 3, 4, 64>}, {pipeline_mode = #tpu.pipeline_mode<synchronous>, transform_indices = @transform_4, window_bounds = array<i64: 3, 32, 64>}, {pipeline_mode = #tpu.pipeline_mode<synchronous>, transform_indices = @transform_5, window_bounds = array<i64: 3, 4, 32>}, {pipeline_mode = #tpu.pipeline_mode<synchronous>, transform_indices = @transform_6, window_bounds = array<i64: 3, 32, 32>}, {pipeline_mode = #tpu.pipeline_mode<synchronous>, transform_indices = @transform_7, window_bounds = array<i64: 1, 64>}, {pipeline_mode = #tpu.pipeline_mode<synchronous>, transform_indices = @transform_8, window_bounds = array<i64: 1, 32>}, {transform_indices = @transform_9, window_bounds = array<i64: 16, 128>}]} {
    %c0 = arith.constant 0 : index
    %c0_0 = arith.constant 0 : index
    %0 = vector.load %arg1[%c0, %c0_0] : memref<16x16xbf16, #tpu.memory_space<vmem>>, vector<16x16xbf16>
    %c0_1 = arith.constant 0 : index
    %c0_2 = arith.constant 0 : index
    %c0_3 = arith.constant 0 : index
    %1 = vector.load %arg2[%c0_1, %c0_2, %c0_3] : memref<4x16x4xbf16, #tpu.memory_space<vmem>>, vector<4x16x4xbf16>
    %c0_4 = arith.constant 0 : index
    %c0_5 = arith.constant 0 : index
    %c0_6 = arith.constant 0 : index
    %2 = vector.load %arg3[%c0_4, %c0_5, %c0_6] : memref<4x16x32xf32, #tpu.memory_space<vmem>>, vector<4x16x32xf32>
    %c0_7 = arith.constant 0 : index
    %c0_8 = arith.constant 0 : index
    %c0_9 = arith.constant 0 : index
    %3 = vector.load %arg4[%c0_7, %c0_8, %c0_9] : memref<3x4x64xbf16, #tpu.memory_space<vmem>>, vector<3x4x64xbf16>
    %c0_10 = arith.constant 0 : index
    %c0_11 = arith.constant 0 : index
    %c0_12 = arith.constant 0 : index
    %4 = vector.load %arg5[%c0_10, %c0_11, %c0_12] : memref<3x32x64xbf16, #tpu.memory_space<vmem>>, vector<3x32x64xbf16>
    %c0_13 = arith.constant 0 : index
    %c0_14 = arith.constant 0 : index
    %c0_15 = arith.constant 0 : index
    %5 = vector.load %arg6[%c0_13, %c0_14, %c0_15] : memref<3x4x32xbf16, #tpu.memory_space<vmem>>, vector<3x4x32xbf16>
    %c0_16 = arith.constant 0 : index
    %c0_17 = arith.constant 0 : index
    %c0_18 = arith.constant 0 : index
    %6 = vector.load %arg7[%c0_16, %c0_17, %c0_18] : memref<3x32x32xbf16, #tpu.memory_space<vmem>>, vector<3x32x32xbf16>
    %c0_19 = arith.constant 0 : index
    %c0_20 = arith.constant 0 : index
    %7 = vector.load %arg8[%c0_19, %c0_20] : memref<1x64xf32, #tpu.memory_space<vmem>>, vector<1x64xf32>
    %c0_21 = arith.constant 0 : index
    %c0_22 = arith.constant 0 : index
    %8 = vector.load %arg9[%c0_21, %c0_22] : memref<1x32xf32, #tpu.memory_space<vmem>>, vector<1x32xf32>
    %9 = vector.shape_cast %2 : vector<4x16x32xf32> to vector<64x32xf32>
    %cst = arith.constant 0.000000e+00 : f32
    %10 = vector.broadcast %cst : f32 to vector<64x64xf32>
    %11 = vector.broadcast %7 : vector<1x64xf32> to vector<64x64xf32>
    %12 = arith.addf %10, %11 : vector<64x64xf32>
    %cst_23 = arith.constant 0.000000e+00 : f32
    %13 = vector.broadcast %cst_23 : f32 to vector<64x32xf32>
    %14 = vector.broadcast %8 : vector<1x32xf32> to vector<64x32xf32>
    %15 = arith.addf %13, %14 : vector<64x32xf32>
    %16 = vector.shape_cast %1 : vector<4x16x4xbf16> to vector<64x4xbf16>
    %17 = arith.truncf %9 : vector<64x32xf32> to vector<64x32xbf16>
    %18 = vector.extract_strided_slice %3 {offsets = [0, 0, 0], sizes = [1, 4, 64], strides = [1, 1, 1]} : vector<3x4x64xbf16> to vector<1x4x64xbf16>
    %19 = vector.shape_cast %18 : vector<1x4x64xbf16> to vector<4x64xbf16>
    %cst_24 = arith.constant dense<0.000000e+00> : vector<64x64xf32>
    %20 = tpu.matmul %16, %19, %cst_24 {dimension_numbers = #tpu.dot_dimension_numbers<[1], [0], [0], [1], [0, 0, 1, 1], [], []>} : vector<64x4xbf16>, vector<4x64xbf16>, vector<64x64xf32> -> vector<64x64xf32>
    %21 = arith.addf %12, %20 : vector<64x64xf32>
    %22 = vector.extract_strided_slice %4 {offsets = [0, 0, 0], sizes = [1, 32, 64], strides = [1, 1, 1]} : vector<3x32x64xbf16> to vector<1x32x64xbf16>
    %23 = vector.shape_cast %22 : vector<1x32x64xbf16> to vector<32x64xbf16>
    %cst_25 = arith.constant dense<0.000000e+00> : vector<64x64xf32>
    %24 = tpu.matmul %17, %23, %cst_25 {dimension_numbers = #tpu.dot_dimension_numbers<[1], [0], [0], [1], [0, 0, 1, 1], [], []>} : vector<64x32xbf16>, vector<32x64xbf16>, vector<64x64xf32> -> vector<64x64xf32>
    %25 = arith.addf %21, %24 : vector<64x64xf32>
    %26 = vector.extract_strided_slice %5 {offsets = [0, 0, 0], sizes = [1, 4, 32], strides = [1, 1, 1]} : vector<3x4x32xbf16> to vector<1x4x32xbf16>
    %27 = vector.shape_cast %26 : vector<1x4x32xbf16> to vector<4x32xbf16>
    %cst_26 = arith.constant dense<0.000000e+00> : vector<64x32xf32>
    %28 = tpu.matmul %16, %27, %cst_26 {dimension_numbers = #tpu.dot_dimension_numbers<[1], [0], [0], [1], [0, 0, 1, 1], [], []>} : vector<64x4xbf16>, vector<4x32xbf16>, vector<64x32xf32> -> vector<64x32xf32>
    %29 = arith.addf %15, %28 : vector<64x32xf32>
    %30 = vector.extract_strided_slice %1 {offsets = [0, 0, 0], sizes = [1, 16, 4], strides = [1, 1, 1]} : vector<4x16x4xbf16> to vector<1x16x4xbf16>
    %31 = vector.shape_cast %30 : vector<1x16x4xbf16> to vector<16x4xbf16>
    %32 = vector.extract_strided_slice %1 {offsets = [1, 0, 0], sizes = [1, 16, 4], strides = [1, 1, 1]} : vector<4x16x4xbf16> to vector<1x16x4xbf16>
    %33 = vector.shape_cast %32 : vector<1x16x4xbf16> to vector<16x4xbf16>
    %34 = vector.extract_strided_slice %1 {offsets = [2, 0, 0], sizes = [1, 16, 4], strides = [1, 1, 1]} : vector<4x16x4xbf16> to vector<1x16x4xbf16>
    %35 = vector.shape_cast %34 : vector<1x16x4xbf16> to vector<16x4xbf16>
    %36 = vector.extract_strided_slice %1 {offsets = [3, 0, 0], sizes = [1, 16, 4], strides = [1, 1, 1]} : vector<4x16x4xbf16> to vector<1x16x4xbf16>
    %37 = vector.shape_cast %36 : vector<1x16x4xbf16> to vector<16x4xbf16>
    %38 = tpu.concatenate %31, %33, %35, %37 in 1 : vector<16x4xbf16>, vector<16x4xbf16>, vector<16x4xbf16>, vector<16x4xbf16> -> vector<16x16xbf16>
    %39 = arith.extf %38 : vector<16x16xbf16> to vector<16x16xf32>
    %40 = vector.extract_strided_slice %2 {offsets = [0, 0, 0], sizes = [1, 16, 32], strides = [1, 1, 1]} : vector<4x16x32xf32> to vector<1x16x32xf32>
    %41 = vector.shape_cast %40 : vector<1x16x32xf32> to vector<16x32xf32>
    %42 = vector.extract_strided_slice %2 {offsets = [1, 0, 0], sizes = [1, 16, 32], strides = [1, 1, 1]} : vector<4x16x32xf32> to vector<1x16x32xf32>
    %43 = vector.shape_cast %42 : vector<1x16x32xf32> to vector<16x32xf32>
    %44 = vector.extract_strided_slice %2 {offsets = [2, 0, 0], sizes = [1, 16, 32], strides = [1, 1, 1]} : vector<4x16x32xf32> to vector<1x16x32xf32>
    %45 = vector.shape_cast %44 : vector<1x16x32xf32> to vector<16x32xf32>
    %46 = vector.extract_strided_slice %2 {offsets = [3, 0, 0], sizes = [1, 16, 32], strides = [1, 1, 1]} : vector<4x16x32xf32> to vector<1x16x32xf32>
    %47 = vector.shape_cast %46 : vector<1x16x32xf32> to vector<16x32xf32>
    %48 = tpu.concatenate %41, %43, %45, %47 in 1 : vector<16x32xf32>, vector<16x32xf32>, vector<16x32xf32>, vector<16x32xf32> -> vector<16x128xf32>
    %49 = arith.truncf %39 : vector<16x16xf32> to vector<16x16xbf16>
    %cst_27 = arith.constant dense<0.000000e+00> : vector<16x16xf32>
    %50 = tpu.matmul %0, %49, %cst_27 {dimension_numbers = #tpu.dot_dimension_numbers<[1], [0], [0], [1], [0, 0, 1, 1], [], []>} : vector<16x16xbf16>, vector<16x16xbf16>, vector<16x16xf32> -> vector<16x16xf32>
    %51 = arith.truncf %48 : vector<16x128xf32> to vector<16x128xbf16>
    %cst_28 = arith.constant dense<0.000000e+00> : vector<16x128xf32>
    %52 = tpu.matmul %0, %51, %cst_28 {dimension_numbers = #tpu.dot_dimension_numbers<[1], [0], [0], [1], [0, 0, 1, 1], [], []>} : vector<16x16xbf16>, vector<16x128xbf16>, vector<16x128xf32> -> vector<16x128xf32>
    %53 = arith.truncf %50 : vector<16x16xf32> to vector<16x16xbf16>
    %54 = vector.extract_strided_slice %53 {offsets = [0, 0], sizes = [16, 4], strides = [1, 1]} : vector<16x16xbf16> to vector<16x4xbf16>
    %55 = vector.extract_strided_slice %53 {offsets = [0, 4], sizes = [16, 4], strides = [1, 1]} : vector<16x16xbf16> to vector<16x4xbf16>
    %56 = vector.extract_strided_slice %53 {offsets = [0, 8], sizes = [16, 4], strides = [1, 1]} : vector<16x16xbf16> to vector<16x4xbf16>
    %57 = vector.extract_strided_slice %53 {offsets = [0, 12], sizes = [16, 4], strides = [1, 1]} : vector<16x16xbf16> to vector<16x4xbf16>
    %58 = tpu.concatenate %54, %55, %56, %57 in 0 : vector<16x4xbf16>, vector<16x4xbf16>, vector<16x4xbf16>, vector<16x4xbf16> -> vector<64x4xbf16>
    %59 = arith.truncf %52 : vector<16x128xf32> to vector<16x128xbf16>
    %60 = vector.extract_strided_slice %59 {offsets = [0, 0], sizes = [16, 32], strides = [1, 1]} : vector<16x128xbf16> to vector<16x32xbf16>
    %61 = vector.extract_strided_slice %59 {offsets = [0, 32], sizes = [16, 32], strides = [1, 1]} : vector<16x128xbf16> to vector<16x32xbf16>
    %62 = vector.extract_strided_slice %59 {offsets = [0, 64], sizes = [16, 32], strides = [1, 1]} : vector<16x128xbf16> to vector<16x32xbf16>
    %63 = vector.extract_strided_slice %59 {offsets = [0, 96], sizes = [16, 32], strides = [1, 1]} : vector<16x128xbf16> to vector<16x32xbf16>
    %64 = tpu.concatenate %60, %61, %62, %63 in 0 : vector<16x32xbf16>, vector<16x32xbf16>, vector<16x32xbf16>, vector<16x32xbf16> -> vector<64x32xbf16>
    %65 = vector.extract_strided_slice %3 {offsets = [1, 0, 0], sizes = [1, 4, 64], strides = [1, 1, 1]} : vector<3x4x64xbf16> to vector<1x4x64xbf16>
    %66 = vector.shape_cast %65 : vector<1x4x64xbf16> to vector<4x64xbf16>
    %cst_29 = arith.constant dense<0.000000e+00> : vector<64x64xf32>
    %67 = tpu.matmul %58, %66, %cst_29 {dimension_numbers = #tpu.dot_dimension_numbers<[1], [0], [0], [1], [0, 0, 1, 1], [], []>} : vector<64x4xbf16>, vector<4x64xbf16>, vector<64x64xf32> -> vector<64x64xf32>
    %68 = arith.addf %25, %67 : vector<64x64xf32>
    %69 = vector.extract_strided_slice %4 {offsets = [1, 0, 0], sizes = [1, 32, 64], strides = [1, 1, 1]} : vector<3x32x64xbf16> to vector<1x32x64xbf16>
    %70 = vector.shape_cast %69 : vector<1x32x64xbf16> to vector<32x64xbf16>
    %cst_30 = arith.constant dense<0.000000e+00> : vector<64x64xf32>
    %71 = tpu.matmul %64, %70, %cst_30 {dimension_numbers = #tpu.dot_dimension_numbers<[1], [0], [0], [1], [0, 0, 1, 1], [], []>} : vector<64x32xbf16>, vector<32x64xbf16>, vector<64x64xf32> -> vector<64x64xf32>
    %72 = arith.addf %68, %71 : vector<64x64xf32>
    %73 = vector.extract_strided_slice %5 {offsets = [1, 0, 0], sizes = [1, 4, 32], strides = [1, 1, 1]} : vector<3x4x32xbf16> to vector<1x4x32xbf16>
    %74 = vector.shape_cast %73 : vector<1x4x32xbf16> to vector<4x32xbf16>
    %cst_31 = arith.constant dense<0.000000e+00> : vector<64x32xf32>
    %75 = tpu.matmul %58, %74, %cst_31 {dimension_numbers = #tpu.dot_dimension_numbers<[1], [0], [0], [1], [0, 0, 1, 1], [], []>} : vector<64x4xbf16>, vector<4x32xbf16>, vector<64x32xf32> -> vector<64x32xf32>
    %76 = arith.addf %29, %75 : vector<64x32xf32>
    %77 = arith.truncf %50 : vector<16x16xf32> to vector<16x16xbf16>
    %cst_32 = arith.constant dense<0.000000e+00> : vector<16x16xf32>
    %78 = tpu.matmul %0, %77, %cst_32 {dimension_numbers = #tpu.dot_dimension_numbers<[1], [0], [0], [1], [0, 0, 1, 1], [], []>} : vector<16x16xbf16>, vector<16x16xbf16>, vector<16x16xf32> -> vector<16x16xf32>
    %cst_33 = arith.constant 2.000000e+00 : f32
    %79 = vector.broadcast %cst_33 : f32 to vector<16x16xf32>
    %80 = arith.mulf %79, %78 : vector<16x16xf32>
    %81 = arith.subf %80, %39 : vector<16x16xf32>
    %82 = arith.truncf %52 : vector<16x128xf32> to vector<16x128xbf16>
    %cst_34 = arith.constant dense<0.000000e+00> : vector<16x128xf32>
    %83 = tpu.matmul %0, %82, %cst_34 {dimension_numbers = #tpu.dot_dimension_numbers<[1], [0], [0], [1], [0, 0, 1, 1], [], []>} : vector<16x16xbf16>, vector<16x128xbf16>, vector<16x128xf32> -> vector<16x128xf32>
    %cst_35 = arith.constant 2.000000e+00 : f32
    %84 = vector.broadcast %cst_35 : f32 to vector<16x128xf32>
    %85 = arith.mulf %84, %83 : vector<16x128xf32>
    %86 = arith.subf %85, %48 : vector<16x128xf32>
    %87 = arith.truncf %81 : vector<16x16xf32> to vector<16x16xbf16>
    %88 = vector.extract_strided_slice %87 {offsets = [0, 0], sizes = [16, 4], strides = [1, 1]} : vector<16x16xbf16> to vector<16x4xbf16>
    %89 = vector.extract_strided_slice %87 {offsets = [0, 4], sizes = [16, 4], strides = [1, 1]} : vector<16x16xbf16> to vector<16x4xbf16>
    %90 = vector.extract_strided_slice %87 {offsets = [0, 8], sizes = [16, 4], strides = [1, 1]} : vector<16x16xbf16> to vector<16x4xbf16>
    %91 = vector.extract_strided_slice %87 {offsets = [0, 12], sizes = [16, 4], strides = [1, 1]} : vector<16x16xbf16> to vector<16x4xbf16>
    %92 = tpu.concatenate %88, %89, %90, %91 in 0 : vector<16x4xbf16>, vector<16x4xbf16>, vector<16x4xbf16>, vector<16x4xbf16> -> vector<64x4xbf16>
    %93 = arith.truncf %86 : vector<16x128xf32> to vector<16x128xbf16>
    %94 = vector.extract_strided_slice %93 {offsets = [0, 0], sizes = [16, 32], strides = [1, 1]} : vector<16x128xbf16> to vector<16x32xbf16>
    %95 = vector.extract_strided_slice %93 {offsets = [0, 32], sizes = [16, 32], strides = [1, 1]} : vector<16x128xbf16> to vector<16x32xbf16>
    %96 = vector.extract_strided_slice %93 {offsets = [0, 64], sizes = [16, 32], strides = [1, 1]} : vector<16x128xbf16> to vector<16x32xbf16>
    %97 = vector.extract_strided_slice %93 {offsets = [0, 96], sizes = [16, 32], strides = [1, 1]} : vector<16x128xbf16> to vector<16x32xbf16>
    %98 = tpu.concatenate %94, %95, %96, %97 in 0 : vector<16x32xbf16>, vector<16x32xbf16>, vector<16x32xbf16>, vector<16x32xbf16> -> vector<64x32xbf16>
    %99 = vector.extract_strided_slice %3 {offsets = [2, 0, 0], sizes = [1, 4, 64], strides = [1, 1, 1]} : vector<3x4x64xbf16> to vector<1x4x64xbf16>
    %100 = vector.shape_cast %99 : vector<1x4x64xbf16> to vector<4x64xbf16>
    %cst_36 = arith.constant dense<0.000000e+00> : vector<64x64xf32>
    %101 = tpu.matmul %92, %100, %cst_36 {dimension_numbers = #tpu.dot_dimension_numbers<[1], [0], [0], [1], [0, 0, 1, 1], [], []>} : vector<64x4xbf16>, vector<4x64xbf16>, vector<64x64xf32> -> vector<64x64xf32>
    %102 = arith.addf %72, %101 : vector<64x64xf32>
    %103 = vector.extract_strided_slice %4 {offsets = [2, 0, 0], sizes = [1, 32, 64], strides = [1, 1, 1]} : vector<3x32x64xbf16> to vector<1x32x64xbf16>
    %104 = vector.shape_cast %103 : vector<1x32x64xbf16> to vector<32x64xbf16>
    %cst_37 = arith.constant dense<0.000000e+00> : vector<64x64xf32>
    %105 = tpu.matmul %98, %104, %cst_37 {dimension_numbers = #tpu.dot_dimension_numbers<[1], [0], [0], [1], [0, 0, 1, 1], [], []>} : vector<64x32xbf16>, vector<32x64xbf16>, vector<64x64xf32> -> vector<64x64xf32>
    %106 = arith.addf %102, %105 : vector<64x64xf32>
    %107 = vector.extract_strided_slice %5 {offsets = [2, 0, 0], sizes = [1, 4, 32], strides = [1, 1, 1]} : vector<3x4x32xbf16> to vector<1x4x32xbf16>
    %108 = vector.shape_cast %107 : vector<1x4x32xbf16> to vector<4x32xbf16>
    %cst_38 = arith.constant dense<0.000000e+00> : vector<64x32xf32>
    %109 = tpu.matmul %92, %108, %cst_38 {dimension_numbers = #tpu.dot_dimension_numbers<[1], [0], [0], [1], [0, 0, 1, 1], [], []>} : vector<64x4xbf16>, vector<4x32xbf16>, vector<64x32xf32> -> vector<64x32xf32>
    %110 = arith.addf %76, %109 : vector<64x32xf32>
    %111 = arith.negf %106 : vector<64x64xf32>
    %112 = math.exp %111 : vector<64x64xf32>
    %cst_39 = arith.constant 1.000000e+00 : f32
    %113 = vector.broadcast %cst_39 : f32 to vector<64x64xf32>
    %114 = arith.addf %113, %112 : vector<64x64xf32>
    %115 = arith.divf %113, %114 : vector<64x64xf32>
    %116 = vector.extract_strided_slice %115 {offsets = [0, 0], sizes = [64, 32], strides = [1, 1]} : vector<64x64xf32> to vector<64x32xf32>
    %117 = vector.extract_strided_slice %115 {offsets = [0, 32], sizes = [64, 32], strides = [1, 1]} : vector<64x64xf32> to vector<64x32xf32>
    %118 = arith.mulf %116, %9 : vector<64x32xf32>
    %119 = arith.truncf %118 : vector<64x32xf32> to vector<64x32xbf16>
    %120 = vector.extract_strided_slice %6 {offsets = [0, 0, 0], sizes = [1, 32, 32], strides = [1, 1, 1]} : vector<3x32x32xbf16> to vector<1x32x32xbf16>
    %121 = vector.shape_cast %120 : vector<1x32x32xbf16> to vector<32x32xbf16>
    %cst_40 = arith.constant dense<0.000000e+00> : vector<64x32xf32>
    %122 = tpu.matmul %119, %121, %cst_40 {dimension_numbers = #tpu.dot_dimension_numbers<[1], [0], [0], [1], [0, 0, 1, 1], [], []>} : vector<64x32xbf16>, vector<32x32xbf16>, vector<64x32xf32> -> vector<64x32xf32>
    %123 = arith.addf %110, %122 : vector<64x32xf32>
    %124 = vector.shape_cast %118 : vector<64x32xf32> to vector<4x16x32xf32>
    %125 = vector.extract_strided_slice %124 {offsets = [0, 0, 0], sizes = [1, 16, 32], strides = [1, 1, 1]} : vector<4x16x32xf32> to vector<1x16x32xf32>
    %126 = vector.shape_cast %125 : vector<1x16x32xf32> to vector<16x32xf32>
    %127 = vector.extract_strided_slice %124 {offsets = [1, 0, 0], sizes = [1, 16, 32], strides = [1, 1, 1]} : vector<4x16x32xf32> to vector<1x16x32xf32>
    %128 = vector.shape_cast %127 : vector<1x16x32xf32> to vector<16x32xf32>
    %129 = vector.extract_strided_slice %124 {offsets = [2, 0, 0], sizes = [1, 16, 32], strides = [1, 1, 1]} : vector<4x16x32xf32> to vector<1x16x32xf32>
    %130 = vector.shape_cast %129 : vector<1x16x32xf32> to vector<16x32xf32>
    %131 = vector.extract_strided_slice %124 {offsets = [3, 0, 0], sizes = [1, 16, 32], strides = [1, 1, 1]} : vector<4x16x32xf32> to vector<1x16x32xf32>
    %132 = vector.shape_cast %131 : vector<1x16x32xf32> to vector<16x32xf32>
    %133 = tpu.concatenate %126, %128, %130, %132 in 1 : vector<16x32xf32>, vector<16x32xf32>, vector<16x32xf32>, vector<16x32xf32> -> vector<16x128xf32>
    %134 = arith.truncf %133 : vector<16x128xf32> to vector<16x128xbf16>
    %cst_41 = arith.constant dense<0.000000e+00> : vector<16x128xf32>
    %135 = tpu.matmul %0, %134, %cst_41 {dimension_numbers = #tpu.dot_dimension_numbers<[1], [0], [0], [1], [0, 0, 1, 1], [], []>} : vector<16x16xbf16>, vector<16x128xbf16>, vector<16x128xf32> -> vector<16x128xf32>
    %136 = arith.truncf %135 : vector<16x128xf32> to vector<16x128xbf16>
    %137 = vector.extract_strided_slice %136 {offsets = [0, 0], sizes = [16, 32], strides = [1, 1]} : vector<16x128xbf16> to vector<16x32xbf16>
    %138 = vector.extract_strided_slice %136 {offsets = [0, 32], sizes = [16, 32], strides = [1, 1]} : vector<16x128xbf16> to vector<16x32xbf16>
    %139 = vector.extract_strided_slice %136 {offsets = [0, 64], sizes = [16, 32], strides = [1, 1]} : vector<16x128xbf16> to vector<16x32xbf16>
    %140 = vector.extract_strided_slice %136 {offsets = [0, 96], sizes = [16, 32], strides = [1, 1]} : vector<16x128xbf16> to vector<16x32xbf16>
    %141 = tpu.concatenate %137, %138, %139, %140 in 0 : vector<16x32xbf16>, vector<16x32xbf16>, vector<16x32xbf16>, vector<16x32xbf16> -> vector<64x32xbf16>
    %142 = vector.extract_strided_slice %6 {offsets = [1, 0, 0], sizes = [1, 32, 32], strides = [1, 1, 1]} : vector<3x32x32xbf16> to vector<1x32x32xbf16>
    %143 = vector.shape_cast %142 : vector<1x32x32xbf16> to vector<32x32xbf16>
    %cst_42 = arith.constant dense<0.000000e+00> : vector<64x32xf32>
    %144 = tpu.matmul %141, %143, %cst_42 {dimension_numbers = #tpu.dot_dimension_numbers<[1], [0], [0], [1], [0, 0, 1, 1], [], []>} : vector<64x32xbf16>, vector<32x32xbf16>, vector<64x32xf32> -> vector<64x32xf32>
    %145 = arith.addf %123, %144 : vector<64x32xf32>
    %146 = arith.truncf %135 : vector<16x128xf32> to vector<16x128xbf16>
    %cst_43 = arith.constant dense<0.000000e+00> : vector<16x128xf32>
    %147 = tpu.matmul %0, %146, %cst_43 {dimension_numbers = #tpu.dot_dimension_numbers<[1], [0], [0], [1], [0, 0, 1, 1], [], []>} : vector<16x16xbf16>, vector<16x128xbf16>, vector<16x128xf32> -> vector<16x128xf32>
    %cst_44 = arith.constant 2.000000e+00 : f32
    %148 = vector.broadcast %cst_44 : f32 to vector<16x128xf32>
    %149 = arith.mulf %148, %147 : vector<16x128xf32>
    %150 = arith.subf %149, %133 : vector<16x128xf32>
    %151 = arith.truncf %150 : vector<16x128xf32> to vector<16x128xbf16>
    %152 = vector.extract_strided_slice %151 {offsets = [0, 0], sizes = [16, 32], strides = [1, 1]} : vector<16x128xbf16> to vector<16x32xbf16>
    %153 = vector.extract_strided_slice %151 {offsets = [0, 32], sizes = [16, 32], strides = [1, 1]} : vector<16x128xbf16> to vector<16x32xbf16>
    %154 = vector.extract_strided_slice %151 {offsets = [0, 64], sizes = [16, 32], strides = [1, 1]} : vector<16x128xbf16> to vector<16x32xbf16>
    %155 = vector.extract_strided_slice %151 {offsets = [0, 96], sizes = [16, 32], strides = [1, 1]} : vector<16x128xbf16> to vector<16x32xbf16>
    %156 = tpu.concatenate %152, %153, %154, %155 in 0 : vector<16x32xbf16>, vector<16x32xbf16>, vector<16x32xbf16>, vector<16x32xbf16> -> vector<64x32xbf16>
    %157 = vector.extract_strided_slice %6 {offsets = [2, 0, 0], sizes = [1, 32, 32], strides = [1, 1, 1]} : vector<3x32x32xbf16> to vector<1x32x32xbf16>
    %158 = vector.shape_cast %157 : vector<1x32x32xbf16> to vector<32x32xbf16>
    %cst_45 = arith.constant dense<0.000000e+00> : vector<64x32xf32>
    %159 = tpu.matmul %156, %158, %cst_45 {dimension_numbers = #tpu.dot_dimension_numbers<[1], [0], [0], [1], [0, 0, 1, 1], [], []>} : vector<64x32xbf16>, vector<32x32xbf16>, vector<64x32xf32> -> vector<64x32xf32>
    %160 = arith.addf %145, %159 : vector<64x32xf32>
    %161 = math.tanh %160 : vector<64x32xf32>
    %162 = arith.mulf %117, %9 : vector<64x32xf32>
    %cst_46 = arith.constant 1.000000e+00 : f32
    %163 = vector.broadcast %cst_46 : f32 to vector<64x32xf32>
    %164 = arith.subf %163, %117 : vector<64x32xf32>
    %165 = arith.mulf %164, %161 : vector<64x32xf32>
    %166 = arith.addf %162, %165 : vector<64x32xf32>
    %167 = vector.shape_cast %166 : vector<64x32xf32> to vector<4x16x32xf32>
    %168 = vector.extract_strided_slice %167 {offsets = [0, 0, 0], sizes = [1, 16, 32], strides = [1, 1, 1]} : vector<4x16x32xf32> to vector<1x16x32xf32>
    %169 = vector.shape_cast %168 : vector<1x16x32xf32> to vector<16x32xf32>
    %170 = vector.extract_strided_slice %167 {offsets = [1, 0, 0], sizes = [1, 16, 32], strides = [1, 1, 1]} : vector<4x16x32xf32> to vector<1x16x32xf32>
    %171 = vector.shape_cast %170 : vector<1x16x32xf32> to vector<16x32xf32>
    %172 = vector.extract_strided_slice %167 {offsets = [2, 0, 0], sizes = [1, 16, 32], strides = [1, 1, 1]} : vector<4x16x32xf32> to vector<1x16x32xf32>
    %173 = vector.shape_cast %172 : vector<1x16x32xf32> to vector<16x32xf32>
    %174 = vector.extract_strided_slice %167 {offsets = [3, 0, 0], sizes = [1, 16, 32], strides = [1, 1, 1]} : vector<4x16x32xf32> to vector<1x16x32xf32>
    %175 = vector.shape_cast %174 : vector<1x16x32xf32> to vector<16x32xf32>
    %176 = tpu.concatenate %169, %171, %173, %175 in 1 : vector<16x32xf32>, vector<16x32xf32>, vector<16x32xf32>, vector<16x32xf32> -> vector<16x128xf32>
    %c0_47 = arith.constant 0 : index
    %c0_48 = arith.constant 0 : index
    %177 = vector.load %arg10[%c0_47, %c0_48] : memref<16x128xf32, #tpu.memory_space<vmem>>, vector<16x128xf32>
    tpu.vector_store %arg10[%c0_47, %c0_48], %176 {strides = array<i32>} : memref<16x128xf32, #tpu.memory_space<vmem>>, vector<16x128xf32>,
    return
  }
  func.func @transform_0(%arg0: i32) -> (i32, i32) {
    %c0_i32 = arith.constant 0 : i32
    %c0_i32_0 = arith.constant 0 : i32
    %c0_i32_1 = arith.constant 0 : i32
    return %c0_i32, %c0_i32_0 : i32, i32
  }
  func.func @transform_1(%arg0: i32) -> (i32, i32, i32) {
    %c0_i32 = arith.constant 0 : i32
    %c0_i32_0 = arith.constant 0 : i32
    %c0_i32_1 = arith.constant 0 : i32
    return %arg0, %c0_i32, %c0_i32_0 : i32, i32, i32
  }
  func.func @transform_2(%arg0: i32) -> (i32, i32, i32) {
    %c0_i32 = arith.constant 0 : i32
    %c0_i32_0 = arith.constant 0 : i32
    %c0_i32_1 = arith.constant 0 : i32
    return %arg0, %c0_i32, %c0_i32_0 : i32, i32, i32
  }
  func.func @transform_3(%arg0: i32) -> (i32, i32, i32) {
    %c0_i32 = arith.constant 0 : i32
    %c0_i32_0 = arith.constant 0 : i32
    %c0_i32_1 = arith.constant 0 : i32
    %c0_i32_2 = arith.constant 0 : i32
    return %c0_i32, %c0_i32_0, %c0_i32_1 : i32, i32, i32
  }
  func.func @transform_4(%arg0: i32) -> (i32, i32, i32) {
    %c0_i32 = arith.constant 0 : i32
    %c0_i32_0 = arith.constant 0 : i32
    %c0_i32_1 = arith.constant 0 : i32
    %c0_i32_2 = arith.constant 0 : i32
    return %c0_i32, %c0_i32_0, %c0_i32_1 : i32, i32, i32
  }
  func.func @transform_5(%arg0: i32) -> (i32, i32, i32) {
    %c0_i32 = arith.constant 0 : i32
    %c0_i32_0 = arith.constant 0 : i32
    %c0_i32_1 = arith.constant 0 : i32
    %c0_i32_2 = arith.constant 0 : i32
    return %c0_i32, %c0_i32_0, %c0_i32_1 : i32, i32, i32
  }
  func.func @transform_6(%arg0: i32) -> (i32, i32, i32) {
    %c0_i32 = arith.constant 0 : i32
    %c0_i32_0 = arith.constant 0 : i32
    %c0_i32_1 = arith.constant 0 : i32
    %c0_i32_2 = arith.constant 0 : i32
    return %c0_i32, %c0_i32_0, %c0_i32_1 : i32, i32, i32
  }
  func.func @transform_7(%arg0: i32) -> (i32, i32) {
    %c0_i32 = arith.constant 0 : i32
    %c0_i32_0 = arith.constant 0 : i32
    %c0_i32_1 = arith.constant 0 : i32
    return %c0_i32, %c0_i32_0 : i32, i32
  }
  func.func @transform_8(%arg0: i32) -> (i32, i32) {
    %c0_i32 = arith.constant 0 : i32
    %c0_i32_0 = arith.constant 0 : i32
    %c0_i32_1 = arith.constant 0 : i32
    return %c0_i32, %c0_i32_0 : i32, i32
  }
  func.func @transform_9(%arg0: i32) -> (i32, i32) {
    %c0_i32 = arith.constant 0 : i32
    %c0_i32_0 = arith.constant 0 : i32
    return %c0_i32, %arg0 : i32, i32
  }
}

</mosaic_0001>

<bundles_post_ra>
// kernel: tpu_custom_call.1
= control target key start
LH: loop header
LB: loop body
LE: loop exit
PB: predicated region body
PF: predicated region fallthrough
CT: control target
= control target key end

     0   :  { %s3589_s0 = inlined_call_operand.vmem [shape: bf16[16,16], index: 0, kind: input, shape index: {}]   ;;  %s3590_s1 = inlined_call_operand.vmem [shape: bf16[8,16,4], index: 1, kind: input, shape index: {}]   ;;  %s3591_s2 = inlined_call_operand.hbm [shape: f32[8,16,32], index: 2, kind: input, shape index: {}]   ;;  %s3592_s3 = inlined_call_operand.vmem [shape: bf16[3,4,64], index: 3, kind: input, shape index: {}]   ;;  %s3593_s4 = inlined_call_operand.vmem [shape: bf16[3,32,64], index: 4, kind: input, shape index: {}]   ;;  %s3594_s5 = inlined_call_operand.vmem [shape: bf16[3,4,32], index: 5, kind: input, shape index: {}]   ;;  %s3595_s6 = inlined_call_operand.hbm [shape: bf16[3,32,32], index: 6, kind: input, shape index: {}]   ;;  %s3596_s7 = inlined_call_operand.vmem [shape: f32[1,64], index: 7, kind: input, shape index: {}]   ;;  %s3597_s8 = inlined_call_operand.vmem [shape: f32[1,32], index: 8, kind: input, shape index: {}]   ;;  %s3598_s9 = inlined_call_operand.hbm [shape: f32[16,256], index: 9, kind: output, shape index: {}]  }
   0x1   :  { %3606 = sst [smem:[#allocation13_spill]] %s3595_s6 }
   0x2   :  { %14 = vsyncpa [#allocation3], 0 }
   0x3   :  { %16 = vsyncpa [#allocation3 + $0x1], 0 }
   0x4   :  { %17 = vsyncpa [#allocation6], 0 }
   0x5   :  { %18 = vsyncpa [#allocation4], 0 }
   0x6   :  { %20 = vsyncpa [#allocation4 + $0x1], 0  ;;  %s2938_s30 = smov 0   ;;  %s2940_s10 = smov 0  }
   0x7   :  { %s2942_s11 = smov 0   ;;  %s2944_s12 = smov 0  }
   0x8 LB: > { %s2959_s13 = sadd.s32 4294967295, %s2866_s12   ;;  %s2247_s14 = sadd.s32 4294967294, %s2866_s12   ;;  %s2866_s12 = sphi %s2944_s12, %s3625_s12   ;;  %s2862_s11 = sphi %s2942_s11, %s3628_s11   ;;  %s2858_s10 = sphi %s2940_s10, %s3627_s10   ;;  %s2854_s30 = sphi %s2938_s30, %s3626_s30  }
   0x9   : > { %p93_p0 = scmp.ne.s32.totalorder %s2858_s10, %s2854_s30  ;;  %p3602_p1 = scmp.eq.s32.totalorder %s2959_s13, 0 }
   0xa   : > { %p249_p3 = scmp.eq.s32.totalorder %s2247_s14, 1  ;;  %p2248_p5 = scmp.ge.s32.totalorder %s2866_s12, 1 }
   0xb   : > { %p2968_p4 = por %p3602_p1, %p93_p0  ;;  %p256_p7 = scmp.lt.s32.totalorder %s2866_s12, 3 }
   0xc   : > { %p2973_p6 = por %p249_p3, %p93_p0  ;;  %s2868_s18 = smov [#allocation5]  }
   0xd   : > { %s3607_s15 = scalar_select %p2968_p4, 1, 0 }
   0xe   : > { %s3608_s16 = scalar_select %p2973_p6, 1, 0 }
   0xf   : > { %p2978_p8 = pnand %p2248_p5, %p256_p7  ;;  %s280_s19 = sshll.u32 %s2868_s18, 4  ;;  %s281_s19 = int_to_ptr.vmem [resolvable:$true] %s280_s19 }
  0x10   : > { %3609 = sst [smem:[#allocation11_spill]] %s3608_s16  ;;  %s2992_s21 = sadd.s32 1, %s2866_s12  }
  0x11   : > { %s3610_s17 = scalar_select %p2978_p8, 1, 0 }
  0x12   : > { %p2613_p9 = pneg %p2978_p8  ;;  %3612 = sst [smem:[#allocation12_spill]] %s2992_s21 }
  0x13   : > { %s80_s22 = sadd.s32 1, %s2862_s11  ;;  %s77_s23 = ssub.s32 %s2866_s12, %s2992_s21 }
  0x14   : > { %p2987_p11 = pnand %p2613_p9, %p3602_p1  ;;  %s2755_s24 = scalar_lea.vmem %s281_s19, 768 }
  0x15   : > { %p2756_p13 = scmp.ne.s32.totalorder %s281_s19, %s2755_s24  ;;  %p2763_p5 = scmp.lt.s32.totalorder %s281_s19, %s281_s19 }
  0x16   : > { %p2746_p12 = pneg %p2987_p11  ;;  %p2764_p7 = scmp.lt.s32.totalorder %s2755_s24, %s2755_s24 }
  0x18   : > { %p2758_p0 = pnand %p2756_p13, %p2746_p12  ;;  %p2765_p10 = por %p2764_p7, %p2763_p5 }
  0x1a   : > { %p2759_p3 = pneg %p2758_p0 }
  0x1c   : > { %p2766_p2 = pnand %p2765_p10, %p2759_p3 }
  0x1e   : > { %2769 = shalt.err (!%p2766_p2)
}
  0x1f   : > { %s2869_s25 = smov 64   ;;  %s2870_s26 = smov 4  }
  0x20   : > { %s3613_s6 = sld [smem:[#allocation13_spill]]  ;;  %p78_p9 = scmp.eq.s32.totalorder %s77_s23, 0 }
  0x21   : > { %p87_p12 = scmp.ne.s32.totalorder %s2862_s11, %s2858_s10  ;;  %p88_p10 = scmp.eq.s32.totalorder %s2866_s12, 0 }
  0x22   : > { %p2626_p2 = scmp.lt.s32.totalorder %s2866_s12, 2  ;;  %p3614_p0 = scmp.eq.s32.totalorder %s2959_s13, 1 }
  0x23   : > { %s3009_s29 = scalar_select %p78_p9, %s2862_s11, %s80_s22  }
  0x24   : > { %p89_p13 = por %p88_p10, %p87_p12  ;;  %p3013_p3 = por %p3614_p0, %p87_p12 }
  0x25   : > { %s310_s18 = sand.u32 1, %s2862_s11   ;;  %s2348_s24 = sshll.u32 %s2866_s12, 10 }
  0x26   : > { %2616 = dma.hbm_to_vmem [thread:$0]  (!%p2987_p11), %s3613_s6, 768, %s281_s19, [#allocation6], %s2869_s25, %s2869_s25, %s2870_s26  }
  0x27   : > { %s3615_s14 = scalar_select %p3013_p3, 1, 0 }
  0x28   : > { %s2251_s21 = sshll.u32 %s310_s18, 6  ;;  %s3022_s27 = scalar_lea.hbm %s3591_s2, %s2348_s24 }
  0x29   : > { %s314_s19 = scalar_lea.vmem [#allocation2], %s2251_s21  ;;  %p3024_p11 = pnand %p2626_p2, %p89_p13 }
  0x2a   : > { %s322_s22 = sshll.u32 %s314_s19, 4  ;;  %s3030_s25 = scalar_lea.sflag [#allocation3], %s310_s18  ;;  %s3028_s22 = int_to_ptr.vmem [resolvable:$true] %s322_s22 }
  0x2b   : > { %s2770_s26 = scalar_lea.hbm %s3022_s27, 1024  ;;  %p2772_p7 = pneg %p3024_p11 }
  0x2c   : > { %p2771_p5 = scmp.ne.s32.totalorder %s3022_s27, %s2770_s26  ;;  %s2775_s21 = scalar_lea.hbm %s3591_s2, 2048 }
  0x2d   : > { %p2776_p10 = scmp.lt.s32.totalorder %s3022_s27, %s3591_s2  ;;  %p2777_p2 = scmp.lt.s32.totalorder %s2775_s21, %s2770_s26 }
  0x2e   : > { %p2773_p9 = pnand %p2772_p7, %p2771_p5 }
  0x2f   : > { %p2778_p13 = por %p2777_p2, %p2776_p10 }
  0x30   : > { %p2774_p12 = pneg %p2773_p9 }
  0x32   : > { %p2779_p0 = pnand %p2778_p13, %p2774_p12 }
  0x34   : > { %2782 = shalt.err (!%p2779_p0)
}
  0x35   : > { %s2783_s18 = scalar_lea.vmem %s3028_s22, 1024  ;;  %s2871_s19 = smov [#allocation2]  }
  0x36   : > { %p2784_p1 = scmp.ne.s32.totalorder %s3028_s22, %s2783_s18  ;;  %s2788_s6 = sshll.u32 %s2871_s19, 4  ;;  %s2789_s6 = int_to_ptr.vmem [resolvable:$false] %s2788_s6 }
  0x37   : > { %s2790_s16 = scalar_lea.vmem %s2789_s6, 2048  ;;  %p2791_p9 = scmp.lt.s32.totalorder %s3028_s22, %s2789_s6 }
  0x38   : > { %p2786_p6 = pnand %p2784_p1, %p2772_p7  ;;  %p2792_p3 = scmp.lt.s32.totalorder %s2790_s16, %s2783_s18 }
  0x3a   : > { %p2787_p5 = pneg %p2786_p6  ;;  %p2793_p4 = por %p2792_p3, %p2791_p9 }
  0x3c   : > { %p2794_p8 = pnand %p2793_p4, %p2787_p5 }
  0x3e   : > { %2797 = shalt.err (!%p2794_p8)
}
  0x3f   : > { %s2872_s26 = smov 128   ;;  %s2873_s28 = smov 8  }
  0x40   : > { %2620 = dma.hbm_to_vmem [thread:$0]  (!%p3024_p11), %s3022_s27, 1024, %s3028_s22, %s3030_s25, %s2872_s26, %s2872_s26, %s2873_s28  }
  0x41   : > { %p3617_p1 = scmp.ne.s32.totalorder %s3610_s17, 0 }
  0x42   : > { %s3054_s21 = sand.u32 (!%p3617_p1), 1, %s2858_s10   ;;  %p3618_p4 = scmp.ne.s32.totalorder (!%p3617_p1), %s3607_s15, 0 }
  0x43   : > { %334 = sbr.rel (%p3617_p1) target bundleno = 2236 (0x8bc), region = 56  ;;  %s2256_s6 = sshll.u32 (!%p3617_p1), %s3054_s21, 6 }
  0x44   : > { %s337_s24 = scalar_lea.sflag (!%p3617_p1), [#allocation3], %s3054_s21  ;;  %s3058_s20 = scalar_lea.vmem (!%p3617_p1), [#allocation2], %s2256_s6 }
  0x48   : > { %2841 = dma.done.wait (%p3618_p4), %s337_s24, 1024  }
  0x49   : > { %2843 = vsyncadd (%p3618_p4), %s337_s24, 4294966272  ;;  %p3619_p6 = scmp.eq.s32.totalorder %s2959_s13, 0 }
  0x4b   : > { %2845 = dma.done.wait (%p3619_p6), [#allocation6], 768   ;;  %p3620_p8 = pmov %p3619_p6 }
  0x4c   : > { %s2259_s17 = sshll.u32 %s2959_s13, 2  ;;  %v3075_v0 = vld [vmem:[%s3058_s20 + $0x18] sm:$0xff]  ;;  %v3078_v1 = vld [vmem:[%s3058_s20 + $0x10] sm:$0xff]  ;;  %s2874_s15 = smov 32   ;;  %vm495_vm0 = vcmask 1041408   ;;  %vm482_vm1 = vcmask 31744  }
  0x4d   : > { %2847 = vsyncadd (%p3620_p8), [#allocation6], 4294966528  ;;  %p386_p3 = scmp.lt.s32.totalorder %s2259_s17, 7  ;;  %767 = vrot.lane.b32.xlu0 %v3075_v0, %s2874_s15  ;;  %765 = vrot.lane.b32.xlu1 %v3078_v1, %s2874_s15  ;;  %s2875_s18 = smov 12   ;;  %v3088_v5 = vld [vmem:[%s3058_s20 + $0x20] sm:$0xff]  ;;  %v2682_v8 = vld [vmem:[%s3593_s4 + $0x8] sm:$0xff]   ;;  %v459_v17 = vpack.c.bf16 %v3075_v0, %v3078_v1 }
  0x4e   : > { %s2876_s19 = smov 4   ;;  %v412_v6 = vld [vmem:[%s3592_s3] sm:$0x3]  ;;  %v3104_v10 = vld [vmem:[%s3058_s20 + $0x30] sm:$0xff]  ;;  %v3110_v12 = vld [vmem:[%s3058_s20 + $0x8] sm:$0xff]  ;;  %vm584_vm2 = vcmask 261120  }
  0x4f   : > { %s3630_s17 = smov (!%p386_p3, %s2259_s17), 7  ;;  %2599 = vmatprep.subr.msk.bf16.mxu1 %vm495_vm0, %v412_v6  ;;  %v497_v7 = vsel %vm495_vm0, %v412_v6, 0  ;;  %v2683_v9 = vld [vmem:[%s3593_s4] sm:$0xff]   ;;  %2598 = vmatprep.subr.msk.bf16.mxu0 %vm495_vm0, %v412_v6  ;;  %s2878_s22 = smov 8   ;;  %v3119_v15 = vld [vmem:[%s3058_s20 + $0x28] sm:$0xff]  ;;  %v3124_v16 = vld [vmem:[%s3058_s20 + $0x38] sm:$0xff] }
  0x50   : > { %s2349_s27 = sshll.u32 %s3630_s17, 3  ;;  %2597 = vmatpush3.bf16.msra.mxu1 %v497_v7  ;;  %v3107_v11 = vld [vmem:[%s3058_s20] sm:$0xff]  ;;  %2429 = vmatpush3.bf16.msra.mxu0 %v497_v7  ;;  %s2879_s23 = smov 96   ;;  %v460_v18 = vpack.c.bf16 %v3119_v15, %v3088_v5  ;;  %v2880_v19 = vmov 0.0   ;;  %v461_v20 = vpack.c.bf16 %v3124_v16, %v3104_v10  ;;  %vm2881_vm3 = vmmov 0   ;;  %v2686_v54 = vld [vmem:[%s3593_s4 + $0x18] sm:$0xff]  }
  0x51   : > { %s3072_s25 = scalar_lea.vmem %s3590_s1, %s2349_s27  ;;  %2438 = vmatprep.subr.bf16.mxu1 %v2682_v8  ;;  %s2877_s27 = smov 64   ;;  %v458_v13 = vpack.c.bf16 %v3110_v12, %v3107_v11  ;;  %v427_v21 = vld [vmem:[%s3594_s5] sm:$0x3]  ;;  %vm754_vm4 = vcmask 64512   ;;  %vm757_vm5 = vcmask 97280   ;;  %vm800_vm6 = vcmask 130048  }
  0x52   : > { %v2679_v2 = vld [vmem:[%s3072_s25 + $0x18] sm:$0xff]   ;;  %v2680_v3 = vld [vmem:[%s3072_s25 + $0x8] sm:$0xff]   ;;  %v2681_v4 = vld [vmem:[%s3072_s25 + $0x10] sm:$0xff]   ;;  %2600 = vmatprep.subr.msk.bf16.mxu0 %vm495_vm0, %v427_v21  ;;  %v671_v22 = vsel %vm495_vm0, %v427_v21, 0  ;;  %vm789_vm7 = vcmask 523264   ;;  %vm792_vm8 = vcmask 785408  }
  0x53   : > { %750 = vrot.lane.b32.xlu1 %v2679_v2, %s2875_s18  ;;  %746 = vrot.lane.b32.xlu0 %v2680_v3, %s2876_s19  ;;  %v2684_v14 = vld [vmem:[%s3072_s25] sm:$0xff]   ;;  %v2687_v55 = vld [vmem:[%s3593_s4 + $0x10] sm:$0xff]   ;;  %s2882_s16 = smov 124   ;;  %s2883_s26 = smov 116  }
  0x54   : > { %2434 = vmatprep.mubr.msk.bf16.mxu1 %vm482_vm1, %v2681_v4  ;;  %2430 = vmatprep.mubr.msk.bf16.mxu0 %vm482_vm1, %v2684_v14  ;;  %v3165_v32 = vld [vmem:[%s3589_s0] sm:$0xff]   ;;  %s2884_s28 = smov 120   ;;  %p3621_p7 = scmp.ne.s32.totalorder %s3615_s14, 0 }
  0x55   : > { %2435 = vmatmul.mubr.msk.bf16.vlgmr.msra.gmra.mxu1 %vm482_vm1, %v2679_v2  ;;  %2431 = vmatmul.mubr.msk.bf16.vlgmr.msra.gmra.mxu0 %vm482_vm1, %v2680_v3  ;;  %v3198_v48 = vld [vmem:[%s3596_s7] ss:$0 sm:$0xff]  ;;  %v428_v21 = vld [vmem:[%s3594_s5 + $0x2] sm:$0x3]  ;;  %s2885_s18 = smov [#allocation7]  }
  0x56   : > { %2439 = vmatpush3.bf16.msra.mxu1 %v2682_v8  ;;  %2442 = vmatprep.mubr.msk.bf16.mxu1 %vm584_vm2, %v458_v13  ;;  %s2802_s19 = sshll.u32 %s2885_s18, 4  ;;  %s2803_s19 = int_to_ptr.vmem [resolvable:$false] %s2802_s19 }
  0x57   : > { %773 = vrot.lane.b32.xlu1 %v3088_v5, %s2877_s27  ;;  %748 = vrot.lane.b32.xlu0 %v2681_v4, %s2878_s22  ;;  %s2804_s6 = scalar_lea.vmem %s2803_s19, 512 }
  0x58   : > { %2440 = vmatprep.subr.bf16.mxu1 %v2683_v9  ;;  %2452 = vmatprep.mubr.msk.bf16.mxu0 %vm482_vm1, %v2684_v14 }
  0x59   : > { %2451 = vmatpush3.bf16.msra.mxu0 %v671_v22 }
  0x5a   : > { %2441 = vmatpush3.bf16.msra.mxu1 %v2683_v9 }
  0x5b   : > { %781 = vrot.lane.b32.xlu1 %v3104_v10, %s2879_s23  ;;  %775 = vrot.lane.b32.xlu0 %v3119_v15, %s2877_s27 }
  0x5c   : > { %2460 = vmatprep.subr.bf16.mxu1 %v2880_v19 }
  0x5d   : > { %2443 = vmatmul.mubr.msk.bf16.vlgmr.msra.gmra.mxu1 %vm584_vm2, %v459_v17  ;;  %2453 = vmatmul.mubr.msk.bf16.vlgmr.msra.gmra.mxu0 %vm482_vm1, %v2680_v3 }
  0x5e   : > { %2446 = vmatprep.mubr.msk.bf16.mxu1 %vm584_vm2, %v460_v18  ;;  %2456 = vmatprep.mubr.msk.bf16.mxu0 %vm482_vm1, %v2681_v4  ;;  %v413_v4 = vld [vmem:[%s3592_s3 + $0x2] sm:$0x3] }
  0x5f   : > { %783 = vrot.lane.b32.xlu0 %v3124_v16, %s2879_s23  ;;  %2601 = vmatprep.subr.msk.bf16.mxu0 %vm495_vm0, %v413_v4  ;;  %v916_v7 = vsel %vm495_vm0, %v413_v4, 0 }
  0x60   : > { %2473 = vmatpush3.bf16.msra.mxu0 %v916_v7 }
  0x61   : > { %2602 = vmatprep.subr.msk.bf16.mxu0 %vm495_vm0, %v428_v21 }
  0x65   : > { %2447 = vmatmul.mubr.msk.bf16.gmra.mxu1 %vm584_vm2, %v461_v20  ;;  %2457 = vmatmul.mubr.msk.bf16.gmra.mxu0 %vm482_vm1, %v2679_v2 }
  0x66   : > { %2462 = vmatprep.mubr.msk.bf16.mxu1 %vm2881_vm3, %v2880_v19 }
  0xbf   : > { %v3155_v23 = vpop.permute.xlu0 %767  ;;  %v3157_v24 = vpop.permute.xlu1 %765 }
  0xc0   : > { %v788_v35 = vsel %vm584_vm2, %v3110_v12, %v3155_v23  ;;  %v787_v36 = vsel %vm584_vm2, %v3107_v11, %v3157_v24 }
  0xc5   : > { %v751_v25 = vpop.permute.xlu1 %750  ;;  %v747_v26 = vpop.permute.xlu0 %746 }
  0xc6   : > { %v753_v27 = vsel %vm482_vm1, %v2684_v14, %v747_v26  ;;  %v1089_v26 = vsel %vm495_vm0, %v428_v21, 0 }
  0xc9   : > { %v774_v28 = vpop.permute.xlu1 %773  ;;  %v749_v29 = vpop.permute.xlu0 %748 }
  0xca   : > { %v756_v30 = vsel %vm754_vm4, %v753_v27, %v749_v29  ;;  %v790_v37 = vsel %vm789_vm7, %v787_v36, %v774_v28 }
  0xcb   : > { %v3160_v31 = vsel %vm757_vm5, %v756_v30, %v751_v25 }
  0xcc   : > { %2461 = vmatpush3.bf16.msra.mxu1 %v3160_v31 }
  0xcd   : > { %v776_v33 = vpop.permute.xlu0 %775  ;;  %2466 = vmatprep.subr.bf16.mxu1 %v2880_v19  ;;  %v782_v34 = vpop.permute.xlu1 %781 }
  0xce   : > { %v791_v38 = vsel %vm789_vm7, %v788_v35, %v776_v33  ;;  %v3182_v40 = vsel %vm792_vm8, %v790_v37, %v782_v34  ;;  %v414_v33 = vld [vmem:[%s3592_s3 + $0x4] sm:$0x3] }
  0xcf   : > { %2463 = vmatmul.mubr.msk.bf16.vlgmr.msra.gmra.mxu1 %vm800_vm6, %v3165_v32  ;;  %v1283_v34 = vsel %vm495_vm0, %v414_v33, 0 }
  0xd0   : > { %2468 = vmatprep.mubr.msk.bf16.mxu1 %vm2881_vm3, %v2880_v19 }
  0xd1   : > { %v784_v39 = vpop.permute.xlu0 %783 }
  0xd2   : > { %v3185_v41 = vsel %vm792_vm8, %v791_v38, %v784_v39 }
  0xd3   : > { %v845_v42 = vpack.c.bf16 %v3185_v41, %v3182_v40 }
  0xd5   : > { %2467 = vmatpush3.bf16.msra.mxu1 %v845_v42 }
  0xd6   : > { %2482 = vmatprep.subr.bf16.mxu1 %v2686_v54 }
  0xd8   : > { %2469 = vmatmul.mubr.msk.bf16.vlgmr.msra.gmra.mxu1 %vm800_vm6, %v3165_v32 }
  0xd9   : > { %2483 = vmatpush3.bf16.msra.mxu1 %v2686_v54 }
  0xda   : > { %2484 = vmatprep.subr.bf16.mxu1 %v2687_v55 }
  0xdd   : > { %2485 = vmatpush3.bf16.msra.mxu1 %v2687_v55 }
  0xde   : > { %2504 = vmatprep.subr.bf16.mxu1 %v2880_v19 }
 0x115   : > { %v2436_v43 = vpop.f32.mrf.mxu1  ;;  %v2432_v35 = vpop.f32.mrf.mxu0 }
 0x116   : > { %v570_v51 = vadd.f32 %v2436_v43, %v3198_v48  ;;  %v566_v54 = vadd.f32 %v2432_v35, %v3198_v48 }
 0x117   : > { %v549_v44 = vpop.f32.mrf.mxu1  ;;  %v533_v36 = vpop.f32.mrf.mxu0 }
 0x118   : > { %v568_v53 = vadd.f32 %v3198_v48, %v549_v44 }
 0x119   : > { %v2437_v45 = vpop.f32.mrf.mxu1  ;;  %v2433_v37 = vpop.f32.mrf.mxu0 }
 0x11a   : > { %v571_v57 = vadd.f32 %v2437_v45, %v3198_v48 }
 0x11b   : > { %v3191_v46 = vpop.f32.mrf.mxu1  ;;  %v536_v38 = vpop.f32.mrf.mxu0 }
 0x11d   : > { %v3193_v47 = vpop.f32.mrf.mxu1  ;;  %v2454_v39 = vpop.f32.mrf.mxu0 }
 0x11f   : > { %v3200_v49 = vpop.f32.mrf.mxu1  ;;  %v707_v42 = vpop.f32.mrf.mxu0 }
 0x121   : > { %v3202_v50 = vpop.f32.mrf.mxu1  ;;  %v3266_v43 = vpop.f32.mrf.mxu0 }
 0x123   : > { %v3205_v52 = vpop.f32.mrf.mxu1  ;;  %v3268_v44 = vpop.f32.mrf.mxu0 }
 0x125   : > { %v2448_v56 = vpop.f32.mrf.mxu1  ;;  %v3270_v45 = vpop.f32.mrf.mxu0 }
 0x126   : > { %v3215_v58 = vadd.f32 %v2448_v56, %v570_v51 }
 0x127   : > { %v647_v59 = vpop.f32.mrf.mxu1  ;;  %v3272_v51 = vpop.f32.mrf.mxu0 }
 0x128   : > { %v3217_v60 = vadd.f32 %v647_v59, %v568_v53 }
 0x129   : > { %v2449_v61 = vpop.f32.mrf.mxu1  ;;  %v3274_v53 = vpop.f32.mrf.mxu0 }
 0x12a   : > { %v3219_v62 = vadd.f32 %v2449_v61, %v571_v57  ;;  %v564_v57 = vadd.f32 %v3198_v48, %v533_v36  ;;  %v567_v61 = vadd.f32 %v2433_v37, %v3198_v48 }
 0x12b   : > { %v3222_v63 = vpop.f32.mrf.mxu1  ;;  %v3277_v56 = vpop.f32.mrf.mxu0 }
 0x18f   : > { %v838_v2 = vpop.f32.mrf.mxu1 }
 0x191   : > { %v2464_v3 = vpop.f32.mrf.mxu1 }
 0x193   : > { %v841_v6 = vpop.f32.mrf.mxu1 }
 0x194   : > { %v887_v8 = vpack.c.bf16 %v841_v6, %v838_v2  ;;  %v664_v2 = vadd.f32 %v3193_v47, %v566_v54  ;;  %v565_v6 = vadd.f32 %v3198_v48, %v536_v38 }
 0x195   : > { %v2465_v9 = vpop.f32.mrf.mxu1 }
 0x196   : > { %2474 = vmatprep.mubr.msk.bf16.mxu0 %vm482_vm1, %v887_v8 }
 0x198   : > { %v880_v13 = vpop.f32.mrf.mxu1 }
 0x19a   : > { %v2470_v14 = vpop.f32.mrf.mxu1 }
 0x19c   : > { %v883_v17 = vpop.f32.mrf.mxu1 }
 0x19d   : > { %v895_v18 = vpack.c.bf16 %v883_v17, %v880_v13  ;;  %v665_v17 = vadd.f32 %v3202_v50, %v567_v61 }
 0x19e   : > { %v2471_v20 = vpop.f32.mrf.mxu1 }
 0x19f   : > { %899 = vrot.lane.b32.xlu0 %v895_v18, %s2877_s27  ;;  %897 = vrot.lane.b32.xlu1 %v895_v18, %s2879_s23 }
 0x1a0   : > { %2486 = vmatprep.mubr.msk.bf16.mxu1 %vm584_vm2, %v895_v18 }
 0x1a3   : > { %889 = vrot.lane.b32.xlu0 %v887_v8, %s2882_s16  ;;  %901 = vrot.lane.b32.xlu1 %v895_v18, %s2874_s15 }
 0x1a7   : > { %893 = vrot.lane.b32.xlu0 %v887_v8, %s2883_s26  ;;  %891 = vrot.lane.b32.xlu1 %v887_v8, %s2884_s28 }
 0x211   : > { %v900_v22 = vpop.permute.xlu0 %899  ;;  %v898_v25 = vpop.permute.xlu1 %897 }
 0x212   : > { %2487 = vmatmul.mubr.msk.bf16.vlgmr.msra.gmra.mxu1 %vm584_vm2, %v898_v25  ;;  %v663_v25 = vadd.f32 %v3205_v52, %v565_v6  ;;  %v3303_v52 = vld [vmem:[%s3597_s8] ss:$0 sm:$0xff] }
 0x213   : > { %2505 = vmatpush3.bf16.msra.mxu1 %v887_v8  ;;  %2490 = vmatprep.mubr.msk.bf16.mxu1 %vm584_vm2, %v900_v22 }
 0x214   : > { %2510 = vmatprep.subr.bf16.mxu1 %v2880_v19 }
 0x215   : > { %v890_v27 = vpop.permute.xlu0 %889  ;;  %v902_v28 = vpop.permute.xlu1 %901 }
 0x216   : > { %2475 = vmatmul.mubr.msk.bf16.vlgmr.msra.gmra.mxu0 %vm482_vm1, %v890_v27 }
 0x217   : > { %2495 = vmatpush3.bf16.msra.mxu0 %v1089_v26 }
 0x218   : > { %2603 = vmatprep.subr.msk.bf16.mxu0 %vm495_vm0, %v414_v33  ;;  %v569_v33 = vadd.f32 %v3198_v48, %v3191_v46 }
 0x219   : > { %v892_v29 = vpop.permute.xlu1 %891  ;;  %v894_v30 = vpop.permute.xlu0 %893 }
 0x21a   : > { %2478 = vmatprep.mubr.msk.bf16.mxu0 %vm482_vm1, %v892_v29  ;;  %2491 = vmatmul.mubr.msk.bf16.gmra.mxu1 %vm584_vm2, %v902_v28 }
 0x21b   : > { %2506 = vmatprep.mubr.msk.bf16.mxu1 %vm2881_vm3, %v2880_v19 }
 0x21e   : > { %2479 = vmatmul.mubr.msk.bf16.gmra.mxu0 %vm482_vm1, %v894_v30 }
 0x21f   : > { %2496 = vmatprep.mubr.msk.bf16.mxu0 %vm482_vm1, %v887_v8  ;;  %v662_v8 = vadd.f32 %v3200_v49, %v564_v57 }
 0x222   : > { %2507 = vmatmul.mubr.msk.bf16.vlgmr.msra.gmra.mxu1 %vm800_vm6, %v3165_v32 }
 0x223   : > { %2511 = vmatpush3.bf16.msra.mxu1 %v895_v18  ;;  %2512 = vmatprep.mubr.msk.bf16.mxu1 %vm2881_vm3, %v2880_v19 }
 0x226   : > { %2497 = vmatmul.mubr.msk.bf16.vlgmr.msra.gmra.mxu0 %vm482_vm1, %v890_v27 }
 0x227   : > { %2500 = vmatprep.mubr.msk.bf16.mxu0 %vm482_vm1, %v892_v29  ;;  %2517 = vmatpush3.bf16.msra.mxu0 %v1283_v34  ;;  %v2688_v34 = vld [vmem:[%s3593_s4 + $0x28] sm:$0xff]  }
 0x228   : > { %2526 = vmatprep.subr.bf16.mxu1 %v2688_v34 }
 0x22a   : > { %2513 = vmatmul.mubr.msk.bf16.vlgmr.msra.gmra.mxu1 %vm800_vm6, %v3165_v32 }
 0x22b   : > { %2527 = vmatpush3.bf16.msra.mxu1 %v2688_v34 }
 0x22e   : > { %2501 = vmatmul.mubr.msk.bf16.gmra.mxu0 %vm482_vm1, %v894_v30 }
 0x2d2   : > { %v2488_v55 = vpop.f32.mrf.mxu1 }
 0x2d4   : > { %v1049_v59 = vpop.f32.mrf.mxu1 }
 0x2d6   : > { %v2476_v3 = vpop.f32.mrf.mxu0  ;;  %v2489_v4 = vpop.f32.mrf.mxu1 }
 0x2d7   : > { %v985_v7 = vadd.f32 %v2476_v3, %v664_v2  ;;  %v738_v3 = vadd.f32 %v3303_v52, %v707_v42 }
 0x2d8   : > { %v952_v9 = vpop.f32.mrf.mxu0  ;;  %v1052_v13 = vpop.f32.mrf.mxu1 }
 0x2d9   : > { %v983_v14 = vadd.f32 %v952_v9, %v662_v8  ;;  %v3285_v18 = vadd.f32 %v2488_v55, %v985_v7  ;;  %v740_v55 = vadd.f32 %v2454_v39, %v3303_v52  ;;  %v741_v9 = vadd.f32 %v3266_v43, %v3303_v52 }
 0x2da   : > { %v2477_v20 = vpop.f32.mrf.mxu0  ;;  %v2492_v21 = vpop.f32.mrf.mxu1 }
 0x2db   : > { %v986_v22 = vadd.f32 %v2477_v20, %v665_v17  ;;  %v3288_v47 = vadd.f32 %v1049_v59, %v983_v14  ;;  %v2689_v59 = vld [vmem:[%s3593_s4 + $0x20] sm:$0xff]  }
 0x2dc   : > { %v955_v26 = vpop.f32.mrf.mxu0  ;;  %v1065_v27 = vpop.f32.mrf.mxu1  ;;  %2528 = vmatprep.subr.bf16.mxu1 %v2689_v59 }
 0x2dd   : > { %v984_v28 = vadd.f32 %v955_v26, %v663_v25  ;;  %v3290_v29 = vadd.f32 %v2489_v4, %v986_v22  ;;  %2529 = vmatpush3.bf16.msra.mxu1 %v2689_v59 }
 0x2de   : > { %v2480_v49 = vpop.f32.mrf.mxu0  ;;  %v2493_v30 = vpop.f32.mrf.mxu1 }
 0x2df   : > { %v989_v50 = vadd.f32 %v2480_v49, %v3215_v58  ;;  %v3298_v35 = vadd.f32 %v1052_v13, %v984_v28  ;;  %v667_v58 = vadd.f32 %v3222_v63, %v569_v33  ;;  %v761_v63 = vunpack.c.l.bf16 %v3160_v31 }
 0x2e0   : > { %v968_v36 = vpop.f32.mrf.mxu0  ;;  %v1068_v37 = vpop.f32.mrf.mxu1  ;;  %v744_v28 = vadd.f32 %v3270_v45, %v3303_v52 }
 0x2e1   : > { %v987_v38 = vadd.f32 %v968_v36, %v3217_v60  ;;  %v3306_v54 = vadd.f32 %v2492_v21, %v989_v50  ;;  %v739_v21 = vadd.f32 %v3303_v52, %v3268_v44  ;;  %v742_v50 = vadd.f32 %v3303_v52, %v3272_v51 }
 0x2e2   : > { %v2481_v46 = vpop.f32.mrf.mxu0  ;;  %v1198_v48 = vpop.f32.mrf.mxu1 }
 0x2e3   : > { %v990_v57 = vadd.f32 %v2481_v46, %v3219_v62  ;;  %v3314_v61 = vadd.f32 %v1065_v27, %v987_v38  ;;  %v1205_v4 = vmul.f32 2.0, %v1198_v48  ;;  %v762_v62 = vunpack.c.h.bf16 %v3160_v31 }
 0x2e4   : > { %v971_v2 = vpop.f32.mrf.mxu0  ;;  %v2508_v60 = vpop.f32.mrf.mxu1 }
 0x2e5   : > { %v988_v6 = vadd.f32 %v971_v2, %v667_v58  ;;  %v3317_v7 = vadd.f32 %v2493_v30, %v990_v57  ;;  %v1207_v22 = vsub.f32 %v1205_v4, %v761_v63  ;;  %v429_v58 = vld [vmem:[%s3594_s5 + $0x4] sm:$0x3]  ;;  %v2690_v63 = vld [vmem:[#allocation5 + $0x8] sm:$0xff]  }
 0x2e6   : > { %v2498_v39 = vpop.f32.mrf.mxu0  ;;  %v1201_v8 = vpop.f32.mrf.mxu1  ;;  %2604 = vmatprep.subr.msk.bf16.mxu0 %vm495_vm0, %v429_v58  ;;  %2548 = vmatprep.subr.bf16.mxu1 %v2690_v63 }
 0x2e7   : > { %v3323_v13 = vadd.f32 %v2498_v39, %v740_v55  ;;  %v1206_v14 = vmul.f32 2.0, %v1201_v8  ;;  %v3325_v17 = vadd.f32 %v1068_v37, %v988_v6  ;;  %v2691_v39 = vld [vmem:[#allocation5] sm:$0xff]  }
 0x2e8   : > { %v1125_v42 = vpop.f32.mrf.mxu0  ;;  %v2509_v20 = vpop.f32.mrf.mxu1 }
 0x2e9   : > { %v1208_v25 = vsub.f32 %v1206_v14, %v762_v62  ;;  %v3329_v26 = vadd.f32 %v1125_v42, %v738_v3 }
 0x2ea   : > { %v2499_v31 = vpop.f32.mrf.mxu0  ;;  %v1243_v27 = vpop.f32.mrf.mxu1 }
 0x2eb   : > { %v1254_v43 = vpack.c.bf16 %v1208_v25, %v1207_v22  ;;  %v3333_v49 = vadd.f32 %v2499_v31, %v741_v9  ;;  %v1250_v34 = vmul.f32 2.0, %v1243_v27 }
 0x2ec   : > { %v1128_v30 = vpop.f32.mrf.mxu0  ;;  %v2514_v33 = vpop.f32.mrf.mxu1 }
 0x2ed   : > { %v3337_v36 = vadd.f32 %v1128_v30, %v739_v21  ;;  %1256 = vrot.lane.b32.xlu1 %v1254_v43, %s2882_s16  ;;  %2518 = vmatprep.mubr.msk.bf16.mxu0 %vm482_vm1, %v1254_v43  ;;  %v1252_v51 = vsub.f32 %v1250_v34, %v3182_v40  ;;  %v1456_v40 = vsel %vm495_vm0, %v429_v58, 0  ;;  %s2344_s16 = sshll.u32 %s2959_s13, 7  ;;  %s2140_s13 = scalar_lea.sflag [#allocation4], %s3054_s21 }
 0x2ee   : > { %v2502_v44 = vpop.f32.mrf.mxu0  ;;  %v1246_v37 = vpop.f32.mrf.mxu1  ;;  %s3543_s20 = scalar_lea.hbm %s3598_s9, %s2344_s16 }
 0x2ef   : > { %v3341_v38 = vadd.f32 %v2502_v44, %v744_v28  ;;  %v1251_v45 = vmul.f32 2.0, %v1246_v37 }
 0x2f0   : > { %v1141_v46 = vpop.f32.mrf.mxu0  ;;  %v2515_v48 = vpop.f32.mrf.mxu1 }
 0x2f1   : > { %v1253_v55 = vsub.f32 %v1251_v45, %v3185_v41  ;;  %v3348_v57 = vadd.f32 %v1141_v46, %v742_v50  ;;  %1258 = vrot.lane.b32.xlu1 %v1254_v43, %s2884_s28 }
 0x2f2   : > { %v3371_v62 = vpop.f32.mrf.mxu0 }
 0x2f3   : > { %v1262_v59 = vpack.c.bf16 %v1253_v55, %v1252_v51 }
 0x2f4   : > { %v3373_v8 = vpop.f32.mrf.mxu0 }
 0x2f5   : > { %1266 = vrot.lane.b32.xlu1 %v1262_v59, %s2877_s27  ;;  %1264 = vrot.lane.b32.xlu0 %v1262_v59, %s2879_s23 }
 0x2f6   : > { %2530 = vmatprep.mubr.msk.bf16.mxu1 %vm584_vm2, %v1262_v59 }
 0x2f9   : > { %1260 = vrot.lane.b32.xlu0 %v1254_v43, %s2883_s26 }
 0x2fd   : > { %1268 = vrot.lane.b32.xlu0 %v1262_v59, %s2874_s15 }
 0x35f   : > { %v1257_v41 = vpop.permute.xlu1 %1256 }
 0x360   : > { %2519 = vmatmul.mubr.msk.bf16.vlgmr.msra.gmra.mxu0 %vm482_vm1, %v1257_v41 }
 0x361   : > { %2539 = vmatpush3.bf16.msra.mxu0 %v1456_v40 }
 0x362   : > { %2560 = vmatprep.subr.bf16.mxu0 %v2880_v19 }
 0x363   : > { %v1259_v2 = vpop.permute.xlu1 %1258 }
 0x364   : > { %2522 = vmatprep.mubr.msk.bf16.mxu0 %vm482_vm1, %v1259_v2 }
 0x367   : > { %v1267_v60 = vpop.permute.xlu1 %1266  ;;  %v1265_v3 = vpop.permute.xlu0 %1264 }
 0x368   : > { %2531 = vmatmul.mubr.msk.bf16.vlgmr.msra.gmra.mxu1 %vm584_vm2, %v1265_v3 }
 0x369   : > { %2534 = vmatprep.mubr.msk.bf16.mxu1 %vm584_vm2, %v1267_v60  ;;  %2549 = vmatpush3.bf16.msra.mxu1 %v2690_v63 }
 0x36a   : > { %2550 = vmatprep.subr.bf16.mxu1 %v2691_v39 }
 0x36b   : > { %v1261_v4 = vpop.permute.xlu0 %1260 }
 0x36c   : > { %2523 = vmatmul.mubr.msk.bf16.gmra.mxu0 %vm482_vm1, %v1261_v4 }
 0x36d   : > { %2540 = vmatprep.mubr.msk.bf16.mxu0 %vm482_vm1, %v1254_v43  ;;  %2551 = vmatpush3.bf16.msra.mxu1 %v2691_v39 }
 0x36f   : > { %v1269_v6 = vpop.permute.xlu0 %1268 }
 0x370   : > { %2535 = vmatmul.mubr.msk.bf16.gmra.mxu1 %vm584_vm2, %v1269_v6 }
 0x374   : > { %2541 = vmatmul.mubr.msk.bf16.vlgmr.msra.gmra.mxu0 %vm482_vm1, %v1257_v41 }
 0x375   : > { %2544 = vmatprep.mubr.msk.bf16.mxu0 %vm482_vm1, %v1259_v2 }
 0x37c   : > { %2545 = vmatmul.mubr.msk.bf16.gmra.mxu0 %vm482_vm1, %v1261_v4 }
 0x37d   : > { %2562 = vmatprep.mubr.msk.bf16.mxu0 %vm2881_vm3, %v2880_v19 }
 0x420   : > { %v2520_v9 = vpop.f32.mrf.mxu0 }
 0x421   : > { %v1352_v20 = vadd.f32 %v2520_v9, %v3285_v18 }
 0x422   : > { %v1319_v14 = vpop.f32.mrf.mxu0 }
 0x423   : > { %v1350_v22 = vadd.f32 %v1319_v14, %v3288_v47 }
 0x424   : > { %v2521_v42 = vpop.f32.mrf.mxu0 }
 0x425   : > { %v1353_v28 = vadd.f32 %v2521_v42, %v3290_v29 }
 0x426   : > { %v1322_v31 = vpop.f32.mrf.mxu0 }
 0x427   : > { %v1351_v34 = vadd.f32 %v1322_v31, %v3298_v35 }
 0x428   : > { %v2532_v21 = vpop.f32.mrf.mxu1 }
 0x429   : > { %v1449_v25 = vadd.f32 %v2532_v21, %v1352_v20 }
 0x42a   : > { %v1416_v27 = vpop.f32.mrf.mxu1 }
 0x42b   : > { %v2317_v43 = vmul.f32 -1.442695, %v1449_v25  ;;  %v1447_v30 = vadd.f32 %v1416_v27, %v1350_v22 }
 0x42c   : > { %v2524_v33 = vpop.f32.mrf.mxu0  ;;  %v2533_v50 = vpop.f32.mrf.mxu1 }
 0x42d   : > { %2696 = vpow2.f32 %v2317_v43  ;;  %v2315_v44 = vmul.f32 -1.442695, %v1447_v30  ;;  %v1450_v37 = vadd.f32 %v2533_v50, %v1353_v28  ;;  %v1356_v18 = vadd.f32 %v2524_v33, %v3306_v54 }
 0x42e   : > { %v1335_v45 = vpop.f32.mrf.mxu0  ;;  %v1419_v46 = vpop.f32.mrf.mxu1 }
 0x42f   : > { %2698 = vpow2.f32 %v2315_v44  ;;  %v2318_v47 = vmul.f32 -1.442695, %v1450_v37  ;;  %v1448_v48 = vadd.f32 %v1419_v46, %v1351_v34  ;;  %v1354_v29 = vadd.f32 %v1335_v45, %v3314_v61 }
 0x430   : > { %v2525_v58 = vpop.f32.mrf.mxu0  ;;  %v2536_v51 = vpop.f32.mrf.mxu1 }
 0x431   : > { %2700 = vpow2.f32 %v2318_v47  ;;  %v2316_v55 = vmul.f32 -1.442695, %v1448_v48  ;;  %v1453_v59 = vadd.f32 %v2536_v51, %v1356_v18  ;;  %v1357_v35 = vadd.f32 %v2525_v58, %v3317_v7 }
 0x432   : > { %v1338_v40 = vpop.f32.mrf.mxu0  ;;  %v1432_v41 = vpop.f32.mrf.mxu1 }
 0x433   : > { %2702 = vpow2.f32 %v2316_v55  ;;  %v2321_v2 = vmul.f32 -1.442695, %v1453_v59  ;;  %v1451_v60 = vadd.f32 %v1432_v41, %v1354_v29  ;;  %v1355_v3 = vadd.f32 %v1338_v40, %v3325_v17 }
 0x434   : > { %v2537_v4 = vpop.f32.mrf.mxu1  ;;  %v2542_v54 = vpop.f32.mrf.mxu0 }
 0x435   : > { %2704 = vpow2.f32 %v2321_v2  ;;  %v2319_v6 = vmul.f32 -1.442695, %v1451_v60  ;;  %v1454_v63 = vadd.f32 %v2537_v4, %v1357_v35  ;;  %v3384_v39 = vadd.f32 %v2542_v54, %v3323_v13 }
 0x436   : > { %v1435_v61 = vpop.f32.mrf.mxu1  ;;  %v1492_v9 = vpop.f32.mrf.mxu0  ;;  %v745_v13 = vadd.f32 %v3274_v53, %v3303_v52 }
 0x437   : > { %2706 = vpow2.f32 %v2319_v6  ;;  %v2322_v14 = vmul.f32 -1.442695, %v1454_v63  ;;  %v1452_v42 = vadd.f32 %v1435_v61, %v1355_v3  ;;  %v3387_v20 = vadd.f32 %v1492_v9, %v3329_v26 }
 0x438   : > { %v2543_v7 = vpop.f32.mrf.mxu0  ;;  %v1163_v50 = vadd.f32 %v3371_v62, %v745_v13 }
 0x439   : > { %2708 = vpow2.f32 %v2322_v14  ;;  %v2320_v21 = vmul.f32 -1.442695, %v1452_v42  ;;  %v3390_v17 = vadd.f32 %v2543_v7, %v3333_v49 }
 0x43a   : > { %v2697_v22 = vpop.eup %2696  ;;  %v1495_v25 = vpop.f32.mrf.mxu0 }
 0x43b   : > { %v1557_v31 = vadd.f32 1.0, %v2697_v22  ;;  %2710 = vpow2.f32 %v2320_v21  ;;  %v3395_v27 = vadd.f32 %v1495_v25, %v3337_v36 }
 0x43c   : > { %v2699_v28 = vpop.eup %2698  ;;  %v2546_v43 = vpop.f32.mrf.mxu0 }
 0x43d   : > { %2712 = vrcp.f32 %v1557_v31  ;;  %v1555_v26 = vadd.f32 1.0, %v2699_v28  ;;  %v3398_v30 = vadd.f32 %v2546_v43, %v3341_v38 }
 0x43e   : > { %v2701_v33 = vpop.eup %2700  ;;  %v1508_v49 = vpop.f32.mrf.mxu0 }
 0x43f   : > { %v1558_v34 = vadd.f32 1.0, %v2701_v33  ;;  %v3402_v44 = vadd.f32 %v1508_v49, %v3348_v57  ;;  %2714 = vrcp.f32 %v1555_v26 }
 0x440   : > { %v2703_v53 = vpop.eup %2702  ;;  %v2547_v37 = vpop.f32.mrf.mxu0 }
 0x441   : > { %2716 = vrcp.f32 %v1558_v34  ;;  %v1556_v36 = vadd.f32 1.0, %v2703_v53  ;;  %v3404_v45 = vadd.f32 %v2547_v37, %v1163_v50  ;;  %v2692_v53 = vld [vmem:[#allocation5 + $0x18] sm:$0xff]   ;;  %v2693_v37 = vld [vmem:[#allocation5 + $0x10] sm:$0xff]  }
 0x442   : > { %v2705_v46 = vpop.eup %2704  ;;  %2566 = vmatprep.subr.bf16.mxu1 %v2692_v53 }
 0x443   : > { %2718 = vrcp.f32 %v1556_v36  ;;  %v1561_v38 = vadd.f32 1.0, %v2705_v46  ;;  %v3459_v36 = vpop.f32.mrf.mxu0 }
 0x444   : > { %v2707_v18 = vpop.eup %2706 }
 0x445   : > { %v1559_v47 = vadd.f32 1.0, %v2707_v18 }
 0x446   : > { %v2709_v48 = vpop.eup %2708 }
 0x447   : > { %2720 = vrcp.f32 %v1559_v47  ;;  %v1562_v58 = vadd.f32 1.0, %v2709_v48 }
 0x448   : > { %v2711_v62 = vpop.eup %2710  ;;  %2722 = vrcp.f32 %v1561_v38 }
 0x449   : > { %2724 = vrcp.f32 %v1562_v58  ;;  %v1560_v57 = vadd.f32 1.0, %v2711_v62  ;;  %v2694_v62 = vld [vmem:[#allocation5 + $0x28] sm:$0xff]  }
 0x44a   : > { %v3406_v51 = vpop.eup %2712 }
 0x44b   : > { %2726 = vrcp.f32 %v1560_v57  ;;  %v1581_v29 = vmul.f32 %v3406_v51, %v3078_v1  ;;  %v2695_v57 = vld [vmem:[#allocation5 + $0x20] sm:$0xff]  }
 0x44c   : > { %v3410_v55 = vpop.eup %2714 }
 0x44d   : > { %1690 = vrot.lane.b32.xlu1 %v1581_v29, %s2874_s15  ;;  %v1579_v2 = vmul.f32 %v3410_v55, %v3107_v11 }
 0x44e   : > { %v3413_v59 = vpop.eup %2716 }
 0x44f   : > { %v1582_v40 = vmul.f32 %v3413_v59, %v3075_v0 }
 0x450   : > { %v3417_v41 = vpop.eup %2718 }
 0x451   : > { %1692 = vrot.lane.b32.xlu0 %v1582_v40, %s2874_s15  ;;  %v1588_v35 = vpack.c.bf16 %v1582_v40, %v1581_v29  ;;  %v1580_v1 = vmul.f32 %v3417_v41, %v3110_v12 }
 0x453   : > { %v1587_v60 = vpack.c.bf16 %v1580_v1, %v1579_v2 }
 0x454   : > { %v3424_v3 = vpop.eup %2720 }
 0x455   : > { %v3426_v4 = vpop.eup %2722  ;;  %2552 = vmatprep.mubr.msk.bf16.mxu1 %vm584_vm2, %v1587_v60  ;;  %v1583_v0 = vmul.f32 %v3424_v3, %v3088_v5 }
 0x456   : > { %v3431_v54 = vpop.eup %2724  ;;  %2553 = vmatmul.mubr.msk.bf16.vlgmr.msra.gmra.mxu1 %vm584_vm2, %v1588_v35  ;;  %v1585_v61 = vmul.f32 %v3426_v4, %v3104_v10 }
 0x457   : > { %1698 = vrot.lane.b32.xlu1 %v1583_v0, %s2877_s27  ;;  %v1586_v63 = vmul.f32 %v3431_v54, %v3124_v16  ;;  %2567 = vmatpush3.bf16.msra.mxu1 %v2692_v53 }
 0x458   : > { %v3435_v6 = vpop.eup %2726  ;;  %2568 = vmatprep.subr.bf16.mxu1 %v2693_v37 }
 0x459   : > { %v1584_v9 = vmul.f32 %v3435_v6, %v3119_v15  ;;  %v1590_v42 = vpack.c.bf16 %v1586_v63, %v1585_v61 }
 0x45b   : > { %1706 = vrot.lane.b32.xlu1 %v1585_v61, %s2879_s23  ;;  %1700 = vrot.lane.b32.xlu0 %v1584_v9, %s2877_s27  ;;  %v1589_v14 = vpack.c.bf16 %v1584_v9, %v1583_v0 }
 0x45c   : > { %2569 = vmatpush3.bf16.msra.mxu1 %v2693_v37 }
 0x45d   : > { %2556 = vmatprep.mubr.msk.bf16.mxu1 %vm584_vm2, %v1589_v14 }
 0x45e   : > { %2557 = vmatmul.mubr.msk.bf16.gmra.mxu1 %vm584_vm2, %v1590_v42 }
 0x45f   : > { %1708 = vrot.lane.b32.xlu0 %v1586_v63, %s2879_s23 }
 0x4bf   : > { %v1691_v7 = vpop.permute.xlu1 %1690 }
 0x4c0   : > { %v1712_v31 = vsel %vm584_vm2, %v1579_v2, %v1691_v7 }
 0x4c3   : > { %v1693_v21 = vpop.permute.xlu0 %1692 }
 0x4c4   : > { %v1713_v28 = vsel %vm584_vm2, %v1580_v1, %v1693_v21 }
 0x4c9   : > { %v1699_v22 = vpop.permute.xlu1 %1698 }
 0x4ca   : > { %v1714_v43 = vsel %vm789_vm7, %v1712_v31, %v1699_v22 }
 0x4cd   : > { %v1701_v25 = vpop.permute.xlu0 %1700  ;;  %v1707_v13 = vpop.permute.xlu1 %1706 }
 0x4ce   : > { %v1715_v26 = vsel %vm789_vm7, %v1713_v28, %v1701_v25  ;;  %v1716_v49 = vsel %vm792_vm8, %v1714_v43, %v1707_v13 }
 0x4d1   : > { %v1709_v33 = vpop.permute.xlu0 %1708 }
 0x4d2   : > { %v1717_v50 = vsel %vm792_vm8, %v1715_v26, %v1709_v33 }
 0x4d3   : > { %v1718_v34 = vpack.c.bf16 %v1717_v50, %v1716_v49 }
 0x4d5   : > { %2561 = vmatpush3.bf16.msra.mxu0 %v1718_v34 }
 0x4d6   : > { %2578 = vmatprep.subr.bf16.mxu0 %v2880_v19 }
 0x4d8   : > { %2563 = vmatmul.mubr.msk.bf16.vlgmr.msra.gmra.mxu0 %vm800_vm6, %v3165_v32 }
 0x4d9   : > { %2580 = vmatprep.mubr.msk.bf16.mxu0 %vm2881_vm3, %v2880_v19 }
 0x598   : > { %v1753_v46 = vpop.f32.mrf.mxu0 }
 0x59a   : > { %v2564_v18 = vpop.f32.mrf.mxu0 }
 0x59c   : > { %v1756_v38 = vpop.f32.mrf.mxu0 }
 0x59d   : > { %v1760_v47 = vpack.c.bf16 %v1756_v38, %v1753_v46 }
 0x59e   : > { %v2565_v48 = vpop.f32.mrf.mxu0 }
 0x59f   : > { %1762 = vrot.lane.b32.xlu1 %v1760_v47, %s2879_s23  ;;  %2579 = vmatpush3.bf16.msra.mxu0 %v1760_v47 }
 0x5a0   : > { %2570 = vmatprep.mubr.msk.bf16.mxu1 %vm584_vm2, %v1760_v47  ;;  %2584 = vmatprep.subr.bf16.mxu0 %v2694_v62 }
 0x5a2   : > { %2581 = vmatmul.mubr.msk.bf16.vlgmr.msra.gmra.mxu0 %vm800_vm6, %v3165_v32 }
 0x5a3   : > { %1764 = vrot.lane.b32.xlu1 %v1760_v47, %s2877_s27  ;;  %2585 = vmatpush3.bf16.msra.mxu0 %v2694_v62 }
 0x5a4   : > { %2586 = vmatprep.subr.bf16.mxu0 %v2695_v57 }
 0x5a7   : > { %2587 = vmatpush3.bf16.msra.mxu0 %v2695_v57 }
 0x611   : > { %v1763_v19 = vpop.permute.xlu1 %1762 }
 0x612   : > { %2571 = vmatmul.mubr.msk.bf16.vlgmr.msra.gmra.mxu1 %vm584_vm2, %v1763_v19 }
 0x615   : > { %v1765_v58 = vpop.permute.xlu1 %1764 }
 0x616   : > { %2574 = vmatprep.mubr.msk.bf16.mxu1 %vm584_vm2, %v1765_v58 }
 0x662   : > { %v1899_v29 = vpop.f32.mrf.mxu0 }
 0x663   : > { %v1906_v35 = vmul.f32 2.0, %v1899_v29 }
 0x664   : > { %v2582_v40 = vpop.f32.mrf.mxu0 }
 0x665   : > { %v1908_v60 = vsub.f32 %v1906_v35, %v1716_v49  ;;  %v743_v49 = vadd.f32 %v3303_v52, %v3277_v56 }
 0x666   : > { %v1902_v2 = vpop.f32.mrf.mxu0 }
 0x667   : > { %v1907_v1 = vmul.f32 2.0, %v1902_v2 }
 0x668   : > { %v2583_v32 = vpop.f32.mrf.mxu0 }
 0x669   : > { %v1909_v0 = vsub.f32 %v1907_v1, %v1717_v50 }
 0x66b   : > { %v1910_v63 = vpack.c.bf16 %v1909_v0, %v1908_v60 }
 0x66d   : > { %1914 = vrot.lane.b32.xlu1 %v1910_v63, %s2877_s27  ;;  %1912 = vrot.lane.b32.xlu0 %v1910_v63, %s2879_s23 }
 0x66e   : > { %2588 = vmatprep.mubr.msk.bf16.mxu0 %vm584_vm2, %v1910_v63 }
 0x671   : > { %2025 = vrot.lane.b32.xlu1 %v3107_v11, %s2874_s15  ;;  %1766 = vrot.lane.b32.xlu0 %v1760_v47, %s2874_s15  ;;  %v1161_v47 = vadd.f32 %v3373_v8, %v743_v49  ;;  %v2052_v49 = vsub.f32 1.0, %v3417_v41 }
 0x673   : > { %v1528_v56 = vadd.f32 %v3459_v36, %v1161_v47 }
 0x675   : > { %2029 = vrot.lane.b32.xlu1 %v3088_v5, %s2874_s15  ;;  %1916 = vrot.lane.b32.xlu0 %v1910_v63, %s2874_s15 }
 0x679   : > { %2033 = vrot.lane.b32.xlu1 %v3104_v10, %s2874_s15  ;;  %2027 = vrot.lane.b32.xlu0 %v3110_v12, %s2874_s15  ;;  %v2554_v10 = vpop.f32.mrf.mxu1 }
 0x67a   : > { %v1682_v2 = vadd.f32 %v2554_v10, %v3384_v39 }
 0x67b   : > { %v1649_v12 = vpop.f32.mrf.mxu1 }
 0x67c   : > { %v1680_v31 = vadd.f32 %v1649_v12, %v3387_v20 }
 0x67d   : > { %2031 = vrot.lane.b32.xlu0 %v3119_v15, %s2874_s15  ;;  %v2555_v14 = vpop.f32.mrf.mxu1 }
 0x67f   : > { %v1652_v42 = vpop.f32.mrf.mxu1 }
 0x680   : > { %v1681_v50 = vadd.f32 %v1652_v42, %v3395_v27 }
 0x681   : > { %2035 = vrot.lane.b32.xlu0 %v3124_v16, %s2874_s15  ;;  %v2558_v15 = vpop.f32.mrf.mxu1 }
 0x682   : > { %v1686_v19 = vadd.f32 %v2558_v15, %v3398_v30 }
 0x683   : > { %v1665_v7 = vpop.f32.mrf.mxu1 }
 0x684   : > { %v1684_v20 = vadd.f32 %v1665_v7, %v3402_v44 }
 0x685   : > { %v2559_v21 = vpop.f32.mrf.mxu1 }
 0x686   : > { %v1687_v44 = vadd.f32 %v2559_v21, %v3404_v45 }
 0x687   : > { %v1668_v16 = vpop.f32.mrf.mxu1 }
 0x688   : > { %v1685_v40 = vadd.f32 %v1668_v16, %v1528_v56 }
 0x6d2   : > { %v2572_v22 = vpop.f32.mrf.mxu1 }
 0x6d3   : > { %v1859_v30 = vadd.f32 %v2572_v22, %v1682_v2  ;;  %v2053_v2 = vsub.f32 1.0, %v3406_v51 }
 0x6d4   : > { %v1826_v25 = vpop.f32.mrf.mxu1 }
 0x6d5   : > { %v1857_v43 = vadd.f32 %v1826_v25, %v1680_v31 }
 0x6d6   : > { %v2573_v13 = vpop.f32.mrf.mxu1 }
 0x6d8   : > { %v1829_v26 = vpop.f32.mrf.mxu1 }
 0x6d9   : > { %v1858_v46 = vadd.f32 %v1829_v26, %v1681_v50 }
 0x6df   : > { %v1915_v11 = vpop.permute.xlu1 %1914  ;;  %v1913_v61 = vpop.permute.xlu0 %1912 }
 0x6e0   : > { %2589 = vmatmul.mubr.msk.bf16.vlgmr.msra.gmra.mxu0 %vm584_vm2, %v1913_v61 }
 0x6e1   : > { %2592 = vmatprep.mubr.msk.bf16.mxu0 %vm584_vm2, %v1915_v11  ;;  %v1683_v11 = vadd.f32 %v2555_v14, %v3390_v17 }
 0x6e3   : > { %v1767_v5 = vpop.permute.xlu0 %1766  ;;  %v2026_v7 = vpop.permute.xlu1 %2025 }
 0x6e4   : > { %2575 = vmatmul.mubr.msk.bf16.gmra.mxu1 %vm584_vm2, %v1767_v5 }
 0x6e7   : > { %v1917_v9 = vpop.permute.xlu0 %1916  ;;  %v2030_v16 = vpop.permute.xlu1 %2029 }
 0x6e8   : > { %2593 = vmatmul.mubr.msk.bf16.gmra.mxu0 %vm584_vm2, %v1917_v9  ;;  %v1860_v9 = vadd.f32 %v2573_v13, %v1683_v11  ;;  %v2051_v13 = vsub.f32 1.0, %v3410_v55 }
 0x6eb   : > { %v2028_v21 = vpop.permute.xlu0 %2027  ;;  %v2034_v25 = vpop.permute.xlu1 %2033 }
 0x6ef   : > { %v2032_v22 = vpop.permute.xlu0 %2031 }
 0x6f3   : > { %v2036_v31 = vpop.permute.xlu0 %2035 }
 0x7a0   : > { %v2590_v28 = vpop.f32.mrf.mxu0 }
 0x7a1   : > { %v2009_v36 = vadd.f32 %v2590_v28, %v1859_v30 }
 0x7a2   : > { %v1976_v33 = vpop.f32.mrf.mxu0 }
 0x7a3   : > { %v2007_v34 = vadd.f32 %v1976_v33, %v1857_v43  ;;  %v2043_v43 = vmul.f32 %v3410_v55, %v2026_v7 }
 0x7a4   : > { %v2576_v53 = vpop.f32.mrf.mxu1  ;;  %v2591_v37 = vpop.f32.mrf.mxu0 }
 0x7a5   : > { %2728 = vtanh.f32 %v2007_v34  ;;  %v1863_v27 = vadd.f32 %v2576_v53, %v1686_v19  ;;  %v2010_v39 = vadd.f32 %v2591_v37, %v1860_v9  ;;  %v2044_v34 = vmul.f32 %v3417_v41, %v2028_v21 }
 0x7a6   : > { %v1842_v18 = vpop.f32.mrf.mxu1  ;;  %v1979_v38 = vpop.f32.mrf.mxu0  ;;  %v2049_v41 = vmul.f32 %v3426_v4, %v2034_v25 }
 0x7a7   : > { %v2008_v48 = vadd.f32 %v1979_v38, %v1858_v46  ;;  %v1861_v52 = vadd.f32 %v1842_v18, %v1684_v20  ;;  %v2055_v46 = vsub.f32 1.0, %v3424_v3  ;;  %v2047_v38 = vmul.f32 %v3424_v3, %v2030_v16 }
 0x7a8   : > { %v2577_v58 = vpop.f32.mrf.mxu1  ;;  %v2594_v62 = vpop.f32.mrf.mxu0  ;;  %v2057_v20 = vsub.f32 1.0, %v3426_v4 }
 0x7a9   : > { %2730 = vtanh.f32 %v2008_v48  ;;  %v2013_v1 = vadd.f32 %v2594_v62, %v1863_v27  ;;  %v1864_v0 = vadd.f32 %v2577_v58, %v1687_v44  ;;  %v2056_v48 = vsub.f32 1.0, %v3435_v6 }
 0x7aa   : > { %v1845_v57 = vpop.f32.mrf.mxu1  ;;  %v1992_v29 = vpop.f32.mrf.mxu0  ;;  %v2048_v62 = vmul.f32 %v3435_v6, %v2032_v22 }
 0x7ab   : > { %v2011_v35 = vadd.f32 %v1992_v29, %v1861_v52  ;;  %v1862_v32 = vadd.f32 %v1845_v57, %v1685_v40  ;;  %v2058_v57 = vsub.f32 1.0, %v3431_v54  ;;  %v2050_v40 = vmul.f32 %v3431_v54, %v2036_v31 }
 0x7ac   : > { %v2595_v8 = vpop.f32.mrf.mxu0  ;;  %v2054_v54 = vsub.f32 1.0, %v3413_v59 }
 0x7ad   : > { %2732 = vtanh.f32 %v2011_v35  ;;  %v2014_v61 = vadd.f32 %v2595_v8, %v1864_v0 }
 0x7ae   : > { %v1995_v60 = vpop.f32.mrf.mxu0  ;;  %2734 = vtanh.f32 %v2013_v1 }
 0x7af   : > { %v2012_v63 = vadd.f32 %v1995_v60, %v1862_v32  ;;  %v2045_v32 = vmul.f32 %v3406_v51, %v3157_v24 }
 0x7b1   : > { %2736 = vtanh.f32 %v2012_v63 }
 0x7b2   : > { %v2729_v5 = vpop.eup %2728  ;;  %2738 = vtanh.f32 %v2009_v36  ;;  %v2046_v36 = vmul.f32 %v3413_v59, %v3155_v23 }
 0x7b3   : > { %2067 = vrot.lane.b32.xlu1 %v2729_v5, %s2874_s15  ;;  %2740 = vtanh.f32 %v2014_v61 }
 0x7b4   : > { %2742 = vtanh.f32 %v2010_v39 }
 0x7b6   : > { %v2731_v45 = vpop.eup %2730 }
 0x7b7   : > { %2069 = vrot.lane.b32.xlu0 %v2731_v45, %s2874_s15 }
 0x7ba   : > { %v2733_v10 = vpop.eup %2732 }
 0x7bb   : > { %2075 = vrot.lane.b32.xlu1 %v2733_v10, %s2874_s15  ;;  %v2735_v12 = vpop.eup %2734 }
 0x7be   : > { %v2737_v42 = vpop.eup %2736 }
 0x7bf   : > { %2079 = vrot.lane.b32.xlu1 %v2735_v12, %s2874_s15  ;;  %2077 = vrot.lane.b32.xlu0 %v2737_v42, %s2874_s15  ;;  %v2739_v17 = vpop.eup %2738 }
 0x7c0   : > { %v2741_v14 = vpop.eup %2740 }
 0x7c1   : > { %v2743_v15 = vpop.eup %2742 }
 0x7c3   : > { %2071 = vrot.lane.b32.xlu1 %v2739_v17, %s2874_s15  ;;  %2081 = vrot.lane.b32.xlu0 %v2741_v14, %s2874_s15 }
 0x7c7   : > { %2073 = vrot.lane.b32.xlu0 %v2743_v15, %s2874_s15 }
 0x825   : > { %v2068_v28 = vpop.permute.xlu1 %2067 }
 0x826   : > { %v2091_v26 = vmul.f32 %v2068_v28, %v2051_v13 }
 0x828   : > { %v2099_v33 = vadd.f32 %v2091_v26, %v2043_v43 }
 0x829   : > { %v2070_v50 = vpop.permute.xlu0 %2069 }
 0x82a   : > { %v2092_v53 = vmul.f32 %v2070_v50, %v2052_v49  ;;  %2109 = vrot.lane.b32.xlu1 %v2099_v33, %s2879_s23 }
 0x82c   : > { %v2100_v37 = vadd.f32 %v2092_v53, %v2044_v34 }
 0x82d   : > { %v2076_v18 = vpop.permute.xlu1 %2075 }
 0x82e   : > { %v2095_v47 = vmul.f32 %v2076_v18, %v2055_v46  ;;  %2111 = vrot.lane.b32.xlu0 %v2100_v37, %s2879_s23  ;;  %s2258_s23 = sshll.u32 %s3054_s21, 4 }
 0x830   : > { %v2103_v55 = vadd.f32 %v2095_v47, %v2047_v38 }
 0x831   : > { %v2080_v19 = vpop.permute.xlu1 %2079  ;;  %v2078_v58 = vpop.permute.xlu0 %2077 }
 0x832   : > { %v2097_v56 = vmul.f32 %v2080_v19, %v2057_v20  ;;  %v2096_v52 = vmul.f32 %v2078_v58, %v2056_v48  ;;  %2117 = vrot.lane.b32.xlu1 %v2103_v55, %s2874_s15 }
 0x834   : > { %v2105_v27 = vadd.f32 %v2097_v56, %v2049_v41  ;;  %v2104_v3 = vadd.f32 %v2096_v52, %v2048_v62 }
 0x835   : > { %v2082_v29 = vpop.permute.xlu0 %2081  ;;  %v2072_v6 = vpop.permute.xlu1 %2071 }
 0x836   : > { %v2098_v35 = vmul.f32 %v2082_v29, %v2058_v57  ;;  %2125 = vrot.lane.b32.xlu1 %v2105_v27, %s2877_s27  ;;  %2119 = vrot.lane.b32.xlu0 %v2104_v3, %s2874_s15  ;;  %v2093_v44 = vmul.f32 %v2072_v6, %v2053_v2  ;;  %s384_s15 = scalar_lea.vmem [#allocation7], %s2258_s23 }
 0x838   : > { %v2106_v4 = vadd.f32 %v2098_v35, %v2050_v40  ;;  %v2101_v0 = vadd.f32 %v2093_v44, %v2045_v32 }
 0x839   : > { %v2074_v1 = vpop.permute.xlu0 %2073 }
 0x83a   : > { %2127 = vrot.lane.b32.xlu0 %v2106_v4, %s2877_s27  ;;  %v2094_v63 = vmul.f32 %v2074_v1, %v2054_v54  ;;  %s2152_s27 = sshll.u32 %s384_s15, 4  ;;  %s3537_s27 = int_to_ptr.vmem [resolvable:$true] %s2152_s27 }
 0x83b   : > { %s2798_s25 = scalar_lea.vmem %s3537_s27, 256  ;;  %p2805_p2 = scmp.lt.s32.totalorder %s3537_s27, %s2803_s19 }
 0x83c   : > { %v2102_v51 = vadd.f32 %v2094_v63, %v2046_v36  ;;  %p2799_p11 = scmp.ne.s32.totalorder %s3537_s27, %s2798_s25  ;;  %p2806_p13 = scmp.lt.s32.totalorder %s2804_s6, %s2798_s25 }
 0x83e   : > { %p2800_p12 = pnand %p2799_p11, %p3621_p7  ;;  %p2807_p0 = por %p2806_p13, %p2805_p2 }
 0x840   : > { %p2801_p10 = pneg %p2800_p12 }
 0x842   : > { %p2808_p5 = pnand %p2807_p0, %p2801_p10 }
 0x89c   : > { %v2110_v8 = vpop.permute.xlu1 %2109 }
 0x89d   : > { %v2131_v11 = vsel %vm584_vm2, %v2110_v8, %v2101_v0 }
 0x8a0   : > { %v2112_v30 = vpop.permute.xlu0 %2111 }
 0x8a1   : > { %v2132_v23 = vsel %vm584_vm2, %v2112_v30, %v2102_v51 }
 0x8a4   : > { %v2118_v60 = vpop.permute.xlu1 %2117 }
 0x8a5   : > { %v2133_v61 = vsel %vm789_vm7, %v2131_v11, %v2118_v60 }
 0x8a8   : > { %v2126_v5 = vpop.permute.xlu1 %2125  ;;  %v2120_v24 = vpop.permute.xlu0 %2119 }
 0x8a9   : > { %v2135_v9 = vsel %vm792_vm8, %v2133_v61, %v2126_v5  ;;  %v2134_v59 = vsel %vm789_vm7, %v2132_v23, %v2120_v24 }
 0x8aa   : > { %2137 = vst [vmem:[%s384_s15] sm:$0xff] %v2135_v9 }
 0x8ac   : > { %v2128_v39 = vpop.permute.xlu0 %2127 }
 0x8ad   : > { %v2136_v45 = vsel %vm792_vm8, %v2134_v59, %v2128_v39 }
 0x8ae   : > { %2138 = vst [vmem:[%s384_s15 + $0x8] sm:$0xff] %v2136_v45 }
 0x8af   : > { %2811 = shalt.err (!%p2808_p5)
}
 0x8b0   : > { %s2812_s24 = scalar_lea.hbm %s3543_s20, 256  ;;  %s2816_s15 = scalar_lea.hbm %s3598_s9, 512 }
 0x8b1   : > { %p2813_p9 = scmp.ne.s32.totalorder %s3543_s20, %s2812_s24  ;;  %p2817_p6 = scmp.lt.s32.totalorder %s3543_s20, %s3598_s9 }
 0x8b2   : > { %p2818_p8 = scmp.lt.s32.totalorder %s2816_s15, %s2812_s24 }
 0x8b3   : > { %p2814_p1 = pnand %p2813_p9, %p3621_p7 }
 0x8b4   : > { %p2819_p3 = por %p2818_p8, %p2817_p6 }
 0x8b5   : > { %p2815_p4 = pneg %p2814_p1 }
 0x8b7   : > { %p2820_p11 = pnand %p2819_p3, %p2815_p4 }
 0x8b9   : > { %2823 = shalt.err (!%p2820_p11)
}
 0x8ba   : > { %s2886_s28 = smov 128   ;;  %s2887_s25 = smov 256  }
 0x8bb   : > { %2611 = dma.vmem_to_hbm [thread:$0]  (%p3621_p7), %s3537_s27, 256, %s3543_s20, %s2140_s13, %s2886_s28, %s2887_s25, %s2878_s22  }
 0x8bc PF: > { %s3622_s18 = sld [smem:[#allocation11_spill]]  ;;  %s2167_s19 = sand.u32 1, %s2854_s30  }
 0x8bd   : > { %p3624_p10 = scmp.ge.s32.totalorder %s2866_s12, 2  ;;  %s2168_s6 = scalar_lea.sflag [#allocation4], %s2167_s19 }
 0x8c2   : > { %p3623_p12 = scmp.ne.s32.totalorder %s3622_s18, 0 }
 0x8c4   : > { %p2622_p2 = pnand %p3624_p10, %p3623_p12 }
 0x8c6   : > { %p2623_p13 = pneg %p2622_p2 }
 0x8c8   : > { %2849 = dma.done.wait (%p2623_p13), %s2168_s6, 256  }
 0x8c9   : > { %2851 = vsyncadd (%p2623_p13), %s2168_s6, 4294967040  ;;  %s3625_s12 = sld [smem:[#allocation12_spill]]  ;;  %s3626_s30 = smov %s2858_s10 }
 0x8ca   : > { %s3627_s10 = smov %s2862_s11  ;;  %s3628_s11 = smov %s3009_s29 }
 0x8cf   : > { %p23_p0 = scmp.ge.s32.totalorder %s3625_s12, 4  }
 0x8d1   :  { %25 = sbr.rel (!%p23_p0) target bundleno = 8 (0x8), region = 108 }
 0x8d6   :  { %2173 = vsyncpa [#allocation3], 1 }
 0x8d7   :  { %2175 = vsyncpa [#allocation3 + $0x1], 1 }
 0x8d8   :  { %2176 = vsyncpa [#allocation6], 1 }
 0x8d9   :  { %2177 = vsyncpa [#allocation4], 1 }
 0x8da   :  { %2179 = vsyncpa [#allocation4 + $0x1], 1 }

</bundles_post_ra>
